<compile_context>
chip_gen: v6e
topology: v6e:2x2x1
jax: 0.10.0
libtpu: 0.0.40
codegen_flags: <defaults>
</compile_context>

<pallas_src>
import functools

import jax
import jax.numpy as jnp
from jax import lax
from jax.experimental import pallas as pl
from jax.experimental.pallas import tpu as pltpu

_LANES = 128
_NEG = -3.0          # sentinel strictly below any cosine (valid values in [-1, 1])
_CAND_LANES = 32     # candidate lanes per chunk (k = 30 <= 32)
_KNOCK_ROWS = 64     # row sub-block so the knockout state stays in vregs


def _round_up(x, m):
    return ((x + m - 1) // m) * m


def _xxt(a, b):
    # a @ b.T without an explicit transpose: contract the feature dim of both.
    return lax.dot_general(a, b, (((1,), (1,)), ((), ())),
                           preferred_element_type=jnp.float32)


def _kth_rowmax_block(s, *, k, n_valid, chunk):
    """Per-row k-th largest (distinct) value of s over the first n_valid cols.

    Chunked knockout: per column chunk, k rounds of "knock out everything tied
    with the row max" on vreg-resident data, collecting the k per-round maxima
    as candidates; a final k-round knockout on the small candidate matrix gives
    the exact same threshold the full-slab knockout would.
    """
    rows, ncols = s.shape
    lane_k = lax.broadcasted_iota(jnp.int32, (rows, _CAND_LANES), 1)

    def knock_round(r, carry):
        w, cand = carry
        rmax = jnp.max(w, axis=1, keepdims=True)
        cand = jnp.where(lane_k == r, rmax, cand)
        w = jnp.where(w >= rmax, jnp.float32(_NEG), w)
        return w, cand

    cands = []
    for c0 in range(0, ncols, chunk):
        cw = min(chunk, ncols - c0)
        w = s[:, c0:c0 + cw]
        if c0 + cw > n_valid:
            # Padded columns (exact zeros) must not enter the top-k.
            colv = (lax.broadcasted_iota(jnp.int32, (rows, cw), 1) + c0) < n_valid
            w = jnp.where(colv, w, jnp.float32(_NEG))
        cand0 = jnp.full((rows, _CAND_LANES), jnp.float32(_NEG), jnp.float32)
        _, cand = lax.fori_loop(0, k, knock_round, (w, cand0))
        cands.append(cand)
    cand_all = cands[0] if len(cands) == 1 else jnp.concatenate(cands, axis=1)

    def final_round(r, carry):
        w, _ = carry
        rmax = jnp.max(w, axis=1, keepdims=True)
        w = jnp.where(w >= rmax, jnp.float32(_NEG), w)
        return w, rmax

    _, thr = lax.fori_loop(0, k, final_round,
                           (cand_all, jnp.zeros((rows, 1), jnp.float32)))
    return thr                                               # (rows, 1)


def _kth_rowmax(s, *, k, n_valid, chunk):
    rows = s.shape[0]
    if rows <= _KNOCK_ROWS:
        return _kth_rowmax_block(s, k=k, n_valid=n_valid, chunk=chunk)
    parts = []
    for r0 in range(0, rows, _KNOCK_ROWS):
        rb = min(_KNOCK_ROWS, rows - r0)
        parts.append(_kth_rowmax_block(s[r0:r0 + rb, :], k=k,
                                       n_valid=n_valid, chunk=chunk))
    return jnp.concatenate(parts, axis=0)


def _ssl_pair_kernel(n1_ref, n2_ref, out_ref, *,
                     ssl_temp, k, tm, n_valid, knock_chunk):
    """One grid step handles anchor rows [i*tm, (i+1)*tm) of both views.

    Output block (8, 128): lanes 0..8 of every sublane hold this block's partial
    sums; lane j meaning:
      0: sum exp(s11)        1: sum exp(s11*m1)    2: sum exp(s22)
      3: sum exp(s22*m2)     4: sum exp(s12)       5: sum exp(s12*m2)
      6: sum exp(s21*m1)     7: sum exp(n1^2/t)    8: sum exp(n2^2/t)
    """
    i = pl.program_id(0)
    r0 = pl.multiple_of(i * tm, tm)

    n1f = n1_ref[...]                       # (n_pad, d) normalized view 1 (resident)
    n2f = n2_ref[...]                       # (n_pad, d) normalized view 2
    n1b = n1_ref[pl.ds(r0, tm), :]          # (tm, d) anchor rows
    n2b = n2_ref[pl.ds(r0, tm), :]

    # Four (tm, n_pad) similarity slabs; MXU has huge slack at d=32.
    s11 = _xxt(n1b, n1f)
    s22 = _xxt(n2b, n2f)
    s12 = _xxt(n1b, n2f)
    s21 = _xxt(n2b, n1f)

    thr1 = _kth_rowmax(s11, k=k, n_valid=n_valid, chunk=knock_chunk)
    thr2 = _kth_rowmax(s22, k=k, n_valid=n_valid, chunk=knock_chunk)
    m1 = s11 >= thr1                        # top-k mask of view-1 self-sim rows
    m2 = s22 >= thr2                        # top-k mask of view-2 self-sim rows

    # Exactly one exp pass per slab; masked sums via selects (exp(s*m) ==
    # where(m, exp(s), 1) for a 0/1 mask).
    e11 = jnp.exp(s11)
    e22 = jnp.exp(s22)
    e12 = jnp.exp(s12)
    e21 = jnp.exp(s21)
    one = jnp.float32(1.0)
    inv_t = jnp.float32(1.0 / ssl_temp)

    def ssum(x):                            # (rows, cols) -> (1, 1)
        return jnp.sum(jnp.sum(x, axis=1, keepdims=True), axis=0, keepdims=True)

    contribs = (
        ssum(e11),
        ssum(jnp.where(m1, e11, one)),
        ssum(e22),
        ssum(jnp.where(m2, e22, one)),
        ssum(e12),                           # == sum exp(s21) by transposition
        ssum(jnp.where(m2, e12, one)),
        ssum(jnp.where(m1, e21, one)),
        ssum(jnp.exp((n1b * n1b) * inv_t)),
        ssum(jnp.exp((n2b * n2b) * inv_t)),
    )

    lane = lax.broadcasted_iota(jnp.int32, (1, _LANES), 1)
    vals = jnp.zeros((1, _LANES), jnp.float32)
    for j, c in enumerate(contribs):
        vals = vals + jnp.where(lane == j,
                                jnp.broadcast_to(c, (1, _LANES)),
                                jnp.float32(0.0))
    out_ref[...] = jnp.broadcast_to(vals, (8, _LANES))   # one lane-dense store


def _normalize(x):
    # F.normalize: x / max(||x||, 1e-12) == x * rsqrt(max(||x||^2, 1e-24))
    x = x.astype(jnp.float32)
    sq = jnp.sum(x * x, axis=1, keepdims=True)
    return x * lax.rsqrt(jnp.maximum(sq, jnp.float32(1e-24)))


def _vmem_capacity_bytes():
    try:
        return int(pltpu.get_tpu_info().vmem_capacity_bytes)
    except Exception:
        return 64 << 20        # safe lower bound across generations (v7x = 64 MiB)


def ssl_pair(e1, e2, *, ssl_temp, k=30, block_rows=None, knock_chunk=128):
    """Returns (ssl_view1, ssl_view2) scalars for one embedding pair."""
    n, d = e1.shape
    assert e2.shape == (n, d)
    if n < k:
        raise ValueError(f"need at least k={k} rows (torch.topk requirement), got {n}")

    # Normalize once in plain JAX; padded rows stay exact zeros.
    n1 = _normalize(e1)
    n2 = _normalize(e2)

    # Row-block size: multiple of 8 sublanes; shrink until the live slab set fits
    # the per-generation VMEM budget.
    tm = 128 if block_rows is None else int(block_rows)
    tm = _round_up(min(tm, _round_up(n, 8)), 8)

    budget = max(_vmem_capacity_bytes() - (8 << 20), 16 << 20)

    def vmem_need(tm_):
        n_pad_ = _round_up(n, tm_)
        slabs = 12 * tm_ * n_pad_ * 4              # sims + exps + select temps
        inputs = 2 * 2 * n_pad_ * _LANES * 4       # 2 inputs, 2 buffers, lane-padded
        return slabs + inputs + (2 << 20)

    while tm > 8 and vmem_need(tm) > budget:
        tm = max(8, _round_up(tm // 2, 8))

    n_pad = _round_up(n, tm)
    nblk = n_pad // tm

    e1p = jnp.pad(n1, ((0, n_pad - n), (0, 0)))
    e2p = jnp.pad(n2, ((0, n_pad - n), (0, 0)))

    kern = functools.partial(
        _ssl_pair_kernel, ssl_temp=float(ssl_temp), k=int(k), tm=int(tm),
        n_valid=int(n), knock_chunk=int(knock_chunk))

    cost = pl.CostEstimate(
        flops=int(4 * 2 * n_pad * n_pad * d),
        transcendentals=int(4 * n_pad * n_pad + 2 * n_pad * d),
        bytes_accessed=int(2 * n_pad * d * 4 + nblk * 8 * _LANES * 4))

    partials = pl.pallas_call(
        kern,
        out_shape=jax.ShapeDtypeStruct((nblk * 8, _LANES), jnp.float32),
        grid_spec=pltpu.PrefetchScalarGridSpec(
            num_scalar_prefetch=0,
            grid=(nblk,),
            in_specs=[
                pl.BlockSpec((n_pad, d), lambda i: (0, 0)),
                pl.BlockSpec((n_pad, d), lambda i: (0, 0)),
            ],
            out_specs=pl.BlockSpec((8, _LANES), lambda i: (i, 0)),
        ),
        compiler_params=pltpu.CompilerParams(
            dimension_semantics=("parallel",),   # row blocks independent (v7x: 2 TCs)
            vmem_limit_bytes=int(min(max(vmem_need(tm), 16 << 20), budget))),
        cost_estimate=cost,
    )(e1p, e2p)

    # Plain-JAX glue: O(nblk) reduction + exact padding corrections + final logs.
    sums = jnp.sum(partials.reshape(nblk, 8, _LANES)[:, 0, :], axis=0)

    # Every padded cell contributes exactly 1.0 (zero rows/cols -> s=0, exp(0)=1,
    # and where(m, 1, 1) == 1), so the corrections are exact in f32.
    pad_slab = jnp.float32(n_pad * n_pad - n * n)
    pad_rows = jnp.float32((n_pad - n) * d)
    A = sums[0] - pad_slab
    Bm = sums[1] - pad_slab
    A2 = sums[2] - pad_slab
    B2m = sums[3] - pad_slab
    C = sums[4] - pad_slab
    D12m = sums[5] - pad_slab
    D21m = sums[6] - pad_slab
    sq1 = sums[7] - pad_rows
    sq2 = sums[8] - pad_rows

    u1 = A - Bm + sq1
    u2 = C - D12m
    v1 = A2 - B2m + sq2
    v2 = C - D21m            # sum exp(s21) == sum exp(s12) == C

    nf = jnp.float32(n)
    # PyTorch's u_0/u_0 (and u1_0/u1_0) is identically 1 (assuming u_0 finite and
    # nonzero), so the whole temp=50 pipeline is dead compute and is dropped.
    ssl_a = -nf * jnp.log(jnp.float32(1.0) + u1 + u2)
    ssl_b = -nf * jnp.log(jnp.float32(1.0) + v1 + v2)
    return ssl_a, ssl_b


def ssl_loss1(uemb1, uemb2, iemb1, iemb2, *, ssl_temp,
              block_rows=None, knock_chunk=128):
    """JAX/Pallas equivalent of SSLLoss1(ssl_temp).forward(...)."""
    ua, ub = ssl_pair(uemb1, uemb2, ssl_temp=ssl_temp,
                      block_rows=block_rows, knock_chunk=knock_chunk)
    ia, ib = ssl_pair(iemb1, iemb2, ssl_temp=ssl_temp,
                      block_rows=block_rows, knock_chunk=knock_chunk)
    return (ia + ua + ib + ub) / 4.0


# ------------------------- pure-JAX reference (checks) -----------------------
def _ssl_pair_ref(e1, e2, *, ssl_temp, temp=50.0, k=30):
    def norm(x):
        nn = jnp.sqrt(jnp.sum(x * x, axis=1, keepdims=True))
        return x / jnp.maximum(nn, 1e-12)

    n1, n2 = norm(e1.astype(jnp.float32)), norm(e2.astype(jnp.float32))

    def topk_mask(nm):
        s = nm @ nm.T
        kth = lax.top_k(s, k)[0][:, k - 1:k]
        return (s >= kth).astype(jnp.float32)

    m1, m2 = topk_mask(n1), topk_mask(n2)
    s11, s22 = n1 @ n1.T, n2 @ n2.T
    s12, s21 = n1 @ n2.T, n2 @ n1.T
    sq1 = jnp.sum(jnp.exp((n1 * n1) / ssl_temp))
    sq2 = jnp.sum(jnp.exp((n2 * n2) / ssl_temp))
    u0 = (jnp.sum(jnp.exp(s11 * m1 / temp), axis=1)
          + jnp.sum(jnp.exp(s12 * m2 / temp), axis=1) - sq1)
    u1 = jnp.sum(jnp.exp(s11)) - jnp.sum(jnp.exp(s11 * m1)) + sq1
    u2 = jnp.sum(jnp.exp(s12)) - jnp.sum(jnp.exp(s12 * m2))
    v0 = (jnp.sum(jnp.exp(s22 * m2 / temp), axis=1)
          + jnp.sum(jnp.exp(s21 * m1 / temp), axis=1) - sq2)
    v1 = jnp.sum(jnp.exp(s22)) - jnp.sum(jnp.exp(s22 * m2)) + sq2
    v2 = jnp.sum(jnp.exp(s21)) - jnp.sum(jnp.exp(s21 * m1))
    ssl_a = -jnp.sum(jnp.log(u0 / u0 + u1 + u2))
    ssl_b = -jnp.sum(jnp.log(v0 / v0 + v1 + v2))
    return ssl_a, ssl_b


def _ref_loss(u1e, u2e, i1e, i2e, ssl_temp):
    ua, ub = _ssl_pair_ref(u1e, u2e, ssl_temp=ssl_temp)
    ia, ib = _ssl_pair_ref(i1e, i2e, ssl_temp=ssl_temp)
    return (ia + ua + ib + ub) / 4.0


if __name__ == "__main__":
    key = jax.random.PRNGKey(0)
    k1, k2, k3, k4 = jax.random.split(key, 4)

    # N must be >= k (=30, hard-coded in the module).
    N_U, N_I, D = 64, 90, 32
    uemb1 = jax.random.normal(k1, (N_U, D), dtype=jnp.float32)
    uemb2 = jax.random.normal(k2, (N_U, D), dtype=jnp.float32)
    iemb1 = jax.random.normal(k3, (N_I, D), dtype=jnp.float32)
    iemb2 = jax.random.normal(k4, (N_I, D), dtype=jnp.float32)

    ref = jax.block_until_ready(_ref_loss(uemb1, uemb2, iemb1, iemb2, 0.5))

    # Config 1: defaults. Item pair (N=90 -> n_pad=96) exercises the exact
    # padding corrections and the knockout row sub-blocking (tm=96 > 64).
    out1 = jax.block_until_ready(
        ssl_loss1(uemb1, uemb2, iemb1, iemb2, ssl_temp=0.5))

    # Config 2: small row blocks + small knockout chunks -> multi-step
    # "parallel" grid (2 and 3 row blocks) and the multi-chunk candidate-merge
    # path of the knockout.
    out2 = jax.block_until_ready(
        ssl_loss1(uemb1, uemb2, iemb1, iemb2, ssl_temp=0.5,
                  block_rows=32, knock_chunk=32))

    for name, val in (("default", out1), ("blocked", out2)):
        if not jnp.allclose(val, ref, rtol=5e-3, atol=5e-2):
            raise AssertionError(f"{name}: pallas={val} ref={ref}")
    print("KERNEL_OK")
</pallas_src>

<mosaic_0001>
module attributes {stable_mosaic.version = 11 : i64} {
  func.func @_ssl_pair_kernel(%arg0: i32, %arg1: memref<64x32xf32, #tpu.memory_space<vmem>>, %arg2: memref<64x32xf32, #tpu.memory_space<vmem>>, %arg3: memref<8x128xf32, #tpu.memory_space<vmem>>) attributes {dimension_semantics = [#tpu.dimension_semantics<parallel>], iteration_bounds = array<i64: 1>, scalar_prefetch = 0 : i64, scratch_operands = 0 : i64, tpu.core_type = #tpu.core_type<tc>, window_params = [{pipeline_mode = #tpu.pipeline_mode<synchronous>, transform_indices = @transform_0, window_bounds = array<i64: 64, 32>}, {pipeline_mode = #tpu.pipeline_mode<synchronous>, transform_indices = @transform_1, window_bounds = array<i64: 64, 32>}, {transform_indices = @transform_2, window_bounds = array<i64: 8, 128>}]} {
    %c64_i32 = arith.constant 64 : i32
    %0 = arith.muli %arg0, %c64_i32 : i32
    %1 = tpu.assume_multiple %0, 64 : i32
    %c0 = arith.constant 0 : index
    %c0_0 = arith.constant 0 : index
    %2 = vector.load %arg1[%c0, %c0_0] : memref<64x32xf32, #tpu.memory_space<vmem>>, vector<64x32xf32>
    %c0_1 = arith.constant 0 : index
    %c0_2 = arith.constant 0 : index
    %3 = vector.load %arg2[%c0_1, %c0_2] : memref<64x32xf32, #tpu.memory_space<vmem>>, vector<64x32xf32>
    %4 = arith.index_cast %1 : i32 to index
    %c0_3 = arith.constant 0 : index
    %5 = vector.load %arg1[%4, %c0_3] : memref<64x32xf32, #tpu.memory_space<vmem>>, vector<64x32xf32>
    %6 = arith.index_cast %1 : i32 to index
    %c0_4 = arith.constant 0 : index
    %7 = vector.load %arg2[%6, %c0_4] : memref<64x32xf32, #tpu.memory_space<vmem>>, vector<64x32xf32>
    %cst = arith.constant dense<0.000000e+00> : vector<64x64xf32>
    %8 = tpu.matmul %5, %2, %cst {dimension_numbers = #tpu.dot_dimension_numbers<[1], [1], [0], [0], [0, 0, 1, 0], [], []>} : vector<64x32xf32>, vector<64x32xf32>, vector<64x64xf32> -> vector<64x64xf32>
    %cst_5 = arith.constant dense<0.000000e+00> : vector<64x64xf32>
    %9 = tpu.matmul %7, %3, %cst_5 {dimension_numbers = #tpu.dot_dimension_numbers<[1], [1], [0], [0], [0, 0, 1, 0], [], []>} : vector<64x32xf32>, vector<64x32xf32>, vector<64x64xf32> -> vector<64x64xf32>
    %cst_6 = arith.constant dense<0.000000e+00> : vector<64x64xf32>
    %10 = tpu.matmul %5, %3, %cst_6 {dimension_numbers = #tpu.dot_dimension_numbers<[1], [1], [0], [0], [0, 0, 1, 0], [], []>} : vector<64x32xf32>, vector<64x32xf32>, vector<64x64xf32> -> vector<64x64xf32>
    %cst_7 = arith.constant dense<0.000000e+00> : vector<64x64xf32>
    %11 = tpu.matmul %7, %2, %cst_7 {dimension_numbers = #tpu.dot_dimension_numbers<[1], [1], [0], [0], [0, 0, 1, 0], [], []>} : vector<64x32xf32>, vector<64x32xf32>, vector<64x64xf32> -> vector<64x64xf32>
    %12 = tpu.iota {dimensions = array<i32: 1>} : vector<64x32xi32>
    %cst_8 = arith.constant -3.000000e+00 : f32
    %13 = vector.broadcast %cst_8 : f32 to vector<64x32xf32>
    %c0_i32 = arith.constant 0 : i32
    %c30_i32 = arith.constant 30 : i32
    %14 = arith.addi %c0_i32, %c30_i32 : i32
    %c1_i32 = arith.constant 1 : i32
    %15:2 = scf.for %arg4 = %c0_i32 to %14 step %c1_i32 iter_args(%arg5 = %8, %arg6 = %13) -> (vector<64x64xf32>, vector<64x32xf32>)  : i32 {
      %cst_61 = arith.constant dense<0xFF800000> : vector<64xf32>
      %154 = vector.multi_reduction <maximumf>, %arg5, %cst_61 [1] : vector<64x64xf32> to vector<64xf32>
      %155 = vector.shape_cast %154 : vector<64xf32> to vector<64x1xf32>
      %156 = vector.broadcast %arg4 : i32 to vector<64x32xi32>
      %157 = arith.cmpi eq, %12, %156 : vector<64x32xi32>
      %158 = vector.shape_cast %155 : vector<64x1xf32> to vector<64x1xf32>
      %159 = vector.broadcast %158 : vector<64x1xf32> to vector<64x32xf32>
      %160 = arith.select %157, %159, %arg6 : vector<64x32xi1>, vector<64x32xf32>
      %161 = vector.broadcast %155 : vector<64x1xf32> to vector<64x64xf32>
      %162 = arith.cmpf oge, %arg5, %161 : vector<64x64xf32>
      %cst_62 = arith.constant -3.000000e+00 : f32
      %163 = vector.broadcast %cst_62 : f32 to vector<64x64xf32>
      %164 = arith.select %162, %163, %arg5 : vector<64x64xi1>, vector<64x64xf32>
      scf.yield %164, %160 : vector<64x64xf32>, vector<64x32xf32>
    }
    %c30_i32_9 = arith.constant 30 : i32
    %cst_10 = arith.constant 0.000000e+00 : f32
    %16 = vector.broadcast %cst_10 : f32 to vector<64x1xf32>
    %c0_i32_11 = arith.constant 0 : i32
    %c30_i32_12 = arith.constant 30 : i32
    %17 = arith.addi %c0_i32_11, %c30_i32_12 : i32
    %c1_i32_13 = arith.constant 1 : i32
    %18:2 = scf.for %arg4 = %c0_i32_11 to %17 step %c1_i32_13 iter_args(%arg5 = %15#1, %arg6 = %16) -> (vector<64x32xf32>, vector<64x1xf32>)  : i32 {
      %cst_61 = arith.constant dense<0xFF800000> : vector<64xf32>
      %154 = vector.multi_reduction <maximumf>, %arg5, %cst_61 [1] : vector<64x32xf32> to vector<64xf32>
      %155 = vector.shape_cast %154 : vector<64xf32> to vector<64x1xf32>
      %156 = vector.broadcast %155 : vector<64x1xf32> to vector<64x32xf32>
      %157 = arith.cmpf oge, %arg5, %156 : vector<64x32xf32>
      %cst_62 = arith.constant -3.000000e+00 : f32
      %158 = vector.broadcast %cst_62 : f32 to vector<64x32xf32>
      %159 = arith.select %157, %158, %arg5 : vector<64x32xi1>, vector<64x32xf32>
      scf.yield %159, %155 : vector<64x32xf32>, vector<64x1xf32>
    }
    %19 = tpu.iota {dimensions = array<i32: 1>} : vector<64x32xi32>
    %cst_14 = arith.constant -3.000000e+00 : f32
    %20 = vector.broadcast %cst_14 : f32 to vector<64x32xf32>
    %c0_i32_15 = arith.constant 0 : i32
    %c30_i32_16 = arith.constant 30 : i32
    %21 = arith.addi %c0_i32_15, %c30_i32_16 : i32
    %c1_i32_17 = arith.constant 1 : i32
    %22:2 = scf.for %arg4 = %c0_i32_15 to %21 step %c1_i32_17 iter_args(%arg5 = %9, %arg6 = %20) -> (vector<64x64xf32>, vector<64x32xf32>)  : i32 {
      %cst_61 = arith.constant dense<0xFF800000> : vector<64xf32>
      %154 = vector.multi_reduction <maximumf>, %arg5, %cst_61 [1] : vector<64x64xf32> to vector<64xf32>
      %155 = vector.shape_cast %154 : vector<64xf32> to vector<64x1xf32>
      %156 = vector.broadcast %arg4 : i32 to vector<64x32xi32>
      %157 = arith.cmpi eq, %19, %156 : vector<64x32xi32>
      %158 = vector.shape_cast %155 : vector<64x1xf32> to vector<64x1xf32>
      %159 = vector.broadcast %158 : vector<64x1xf32> to vector<64x32xf32>
      %160 = arith.select %157, %159, %arg6 : vector<64x32xi1>, vector<64x32xf32>
      %161 = vector.broadcast %155 : vector<64x1xf32> to vector<64x64xf32>
      %162 = arith.cmpf oge, %arg5, %161 : vector<64x64xf32>
      %cst_62 = arith.constant -3.000000e+00 : f32
      %163 = vector.broadcast %cst_62 : f32 to vector<64x64xf32>
      %164 = arith.select %162, %163, %arg5 : vector<64x64xi1>, vector<64x64xf32>
      scf.yield %164, %160 : vector<64x64xf32>, vector<64x32xf32>
    }
    %c30_i32_18 = arith.constant 30 : i32
    %cst_19 = arith.constant 0.000000e+00 : f32
    %23 = vector.broadcast %cst_19 : f32 to vector<64x1xf32>
    %c0_i32_20 = arith.constant 0 : i32
    %c30_i32_21 = arith.constant 30 : i32
    %24 = arith.addi %c0_i32_20, %c30_i32_21 : i32
    %c1_i32_22 = arith.constant 1 : i32
    %25:2 = scf.for %arg4 = %c0_i32_20 to %24 step %c1_i32_22 iter_args(%arg5 = %22#1, %arg6 = %23) -> (vector<64x32xf32>, vector<64x1xf32>)  : i32 {
      %cst_61 = arith.constant dense<0xFF800000> : vector<64xf32>
      %154 = vector.multi_reduction <maximumf>, %arg5, %cst_61 [1] : vector<64x32xf32> to vector<64xf32>
      %155 = vector.shape_cast %154 : vector<64xf32> to vector<64x1xf32>
      %156 = vector.broadcast %155 : vector<64x1xf32> to vector<64x32xf32>
      %157 = arith.cmpf oge, %arg5, %156 : vector<64x32xf32>
      %cst_62 = arith.constant -3.000000e+00 : f32
      %158 = vector.broadcast %cst_62 : f32 to vector<64x32xf32>
      %159 = arith.select %157, %158, %arg5 : vector<64x32xi1>, vector<64x32xf32>
      scf.yield %159, %155 : vector<64x32xf32>, vector<64x1xf32>
    }
    %26 = vector.broadcast %18#1 : vector<64x1xf32> to vector<64x64xf32>
    %27 = arith.cmpf oge, %8, %26 : vector<64x64xf32>
    %28 = vector.broadcast %25#1 : vector<64x1xf32> to vector<64x64xf32>
    %29 = arith.cmpf oge, %9, %28 : vector<64x64xf32>
    %30 = math.exp %8 : vector<64x64xf32>
    %31 = math.exp %9 : vector<64x64xf32>
    %32 = math.exp %10 : vector<64x64xf32>
    %33 = math.exp %11 : vector<64x64xf32>
    %cst_23 = arith.constant dense<0.000000e+00> : vector<64xf32>
    %34 = vector.multi_reduction <add>, %30, %cst_23 [1] : vector<64x64xf32> to vector<64xf32>
    %35 = vector.shape_cast %34 : vector<64xf32> to vector<64x1xf32>
    %cst_24 = arith.constant dense<0.000000e+00> : vector<1xf32>
    %36 = vector.multi_reduction <add>, %35, %cst_24 [0] : vector<64x1xf32> to vector<1xf32>
    %37 = vector.shape_cast %36 : vector<1xf32> to vector<1x1xf32>
    %cst_25 = arith.constant 1.000000e+00 : f32
    %38 = vector.broadcast %cst_25 : f32 to vector<64x64xf32>
    %39 = arith.select %27, %30, %38 : vector<64x64xi1>, vector<64x64xf32>
    %cst_26 = arith.constant dense<0.000000e+00> : vector<64xf32>
    %40 = vector.multi_reduction <add>, %39, %cst_26 [1] : vector<64x64xf32> to vector<64xf32>
    %41 = vector.shape_cast %40 : vector<64xf32> to vector<64x1xf32>
    %cst_27 = arith.constant dense<0.000000e+00> : vector<1xf32>
    %42 = vector.multi_reduction <add>, %41, %cst_27 [0] : vector<64x1xf32> to vector<1xf32>
    %43 = vector.shape_cast %42 : vector<1xf32> to vector<1x1xf32>
    %cst_28 = arith.constant dense<0.000000e+00> : vector<64xf32>
    %44 = vector.multi_reduction <add>, %31, %cst_28 [1] : vector<64x64xf32> to vector<64xf32>
    %45 = vector.shape_cast %44 : vector<64xf32> to vector<64x1xf32>
    %cst_29 = arith.constant dense<0.000000e+00> : vector<1xf32>
    %46 = vector.multi_reduction <add>, %45, %cst_29 [0] : vector<64x1xf32> to vector<1xf32>
    %47 = vector.shape_cast %46 : vector<1xf32> to vector<1x1xf32>
    %cst_30 = arith.constant 1.000000e+00 : f32
    %48 = vector.broadcast %cst_30 : f32 to vector<64x64xf32>
    %49 = arith.select %29, %31, %48 : vector<64x64xi1>, vector<64x64xf32>
    %cst_31 = arith.constant dense<0.000000e+00> : vector<64xf32>
    %50 = vector.multi_reduction <add>, %49, %cst_31 [1] : vector<64x64xf32> to vector<64xf32>
    %51 = vector.shape_cast %50 : vector<64xf32> to vector<64x1xf32>
    %cst_32 = arith.constant dense<0.000000e+00> : vector<1xf32>
    %52 = vector.multi_reduction <add>, %51, %cst_32 [0] : vector<64x1xf32> to vector<1xf32>
    %53 = vector.shape_cast %52 : vector<1xf32> to vector<1x1xf32>
    %cst_33 = arith.constant dense<0.000000e+00> : vector<64xf32>
    %54 = vector.multi_reduction <add>, %32, %cst_33 [1] : vector<64x64xf32> to vector<64xf32>
    %55 = vector.shape_cast %54 : vector<64xf32> to vector<64x1xf32>
    %cst_34 = arith.constant dense<0.000000e+00> : vector<1xf32>
    %56 = vector.multi_reduction <add>, %55, %cst_34 [0] : vector<64x1xf32> to vector<1xf32>
    %57 = vector.shape_cast %56 : vector<1xf32> to vector<1x1xf32>
    %cst_35 = arith.constant 1.000000e+00 : f32
    %58 = vector.broadcast %cst_35 : f32 to vector<64x64xf32>
    %59 = arith.select %29, %32, %58 : vector<64x64xi1>, vector<64x64xf32>
    %cst_36 = arith.constant dense<0.000000e+00> : vector<64xf32>
    %60 = vector.multi_reduction <add>, %59, %cst_36 [1] : vector<64x64xf32> to vector<64xf32>
    %61 = vector.shape_cast %60 : vector<64xf32> to vector<64x1xf32>
    %cst_37 = arith.constant dense<0.000000e+00> : vector<1xf32>
    %62 = vector.multi_reduction <add>, %61, %cst_37 [0] : vector<64x1xf32> to vector<1xf32>
    %63 = vector.shape_cast %62 : vector<1xf32> to vector<1x1xf32>
    %cst_38 = arith.constant 1.000000e+00 : f32
    %64 = vector.broadcast %cst_38 : f32 to vector<64x64xf32>
    %65 = arith.select %27, %33, %64 : vector<64x64xi1>, vector<64x64xf32>
    %cst_39 = arith.constant dense<0.000000e+00> : vector<64xf32>
    %66 = vector.multi_reduction <add>, %65, %cst_39 [1] : vector<64x64xf32> to vector<64xf32>
    %67 = vector.shape_cast %66 : vector<64xf32> to vector<64x1xf32>
    %cst_40 = arith.constant dense<0.000000e+00> : vector<1xf32>
    %68 = vector.multi_reduction <add>, %67, %cst_40 [0] : vector<64x1xf32> to vector<1xf32>
    %69 = vector.shape_cast %68 : vector<1xf32> to vector<1x1xf32>
    %70 = arith.mulf %5, %5 : vector<64x32xf32>
    %cst_41 = arith.constant 2.000000e+00 : f32
    %71 = vector.broadcast %cst_41 : f32 to vector<64x32xf32>
    %72 = arith.mulf %70, %71 : vector<64x32xf32>
    %73 = math.exp %72 : vector<64x32xf32>
    %cst_42 = arith.constant dense<0.000000e+00> : vector<64xf32>
    %74 = vector.multi_reduction <add>, %73, %cst_42 [1] : vector<64x32xf32> to vector<64xf32>
    %75 = vector.shape_cast %74 : vector<64xf32> to vector<64x1xf32>
    %cst_43 = arith.constant dense<0.000000e+00> : vector<1xf32>
    %76 = vector.multi_reduction <add>, %75, %cst_43 [0] : vector<64x1xf32> to vector<1xf32>
    %77 = vector.shape_cast %76 : vector<1xf32> to vector<1x1xf32>
    %78 = arith.mulf %7, %7 : vector<64x32xf32>
    %cst_44 = arith.constant 2.000000e+00 : f32
    %79 = vector.broadcast %cst_44 : f32 to vector<64x32xf32>
    %80 = arith.mulf %78, %79 : vector<64x32xf32>
    %81 = math.exp %80 : vector<64x32xf32>
    %cst_45 = arith.constant dense<0.000000e+00> : vector<64xf32>
    %82 = vector.multi_reduction <add>, %81, %cst_45 [1] : vector<64x32xf32> to vector<64xf32>
    %83 = vector.shape_cast %82 : vector<64xf32> to vector<64x1xf32>
    %cst_46 = arith.constant dense<0.000000e+00> : vector<1xf32>
    %84 = vector.multi_reduction <add>, %83, %cst_46 [0] : vector<64x1xf32> to vector<1xf32>
    %85 = vector.shape_cast %84 : vector<1xf32> to vector<1x1xf32>
    %86 = tpu.iota {dimensions = array<i32: 1>} : vector<1x128xi32>
    %cst_47 = arith.constant 0.000000e+00 : f32
    %87 = vector.broadcast %cst_47 : f32 to vector<1x128xf32>
    %c0_i32_48 = arith.constant 0 : i32
    %88 = vector.broadcast %c0_i32_48 : i32 to vector<1x128xi32>
    %89 = arith.cmpi eq, %86, %88 : vector<1x128xi32>
    %90 = vector.shape_cast %37 : vector<1x1xf32> to vector<1x1xf32>
    %91 = vector.broadcast %90 : vector<1x1xf32> to vector<1x128xf32>
    %cst_49 = arith.constant 0.000000e+00 : f32
    %92 = vector.broadcast %cst_49 : f32 to vector<1x128xf32>
    %93 = arith.select %89, %91, %92 : vector<1x128xi1>, vector<1x128xf32>
    %94 = arith.addf %87, %93 : vector<1x128xf32>
    %c1_i32_50 = arith.constant 1 : i32
    %95 = vector.broadcast %c1_i32_50 : i32 to vector<1x128xi32>
    %96 = arith.cmpi eq, %86, %95 : vector<1x128xi32>
    %97 = vector.shape_cast %43 : vector<1x1xf32> to vector<1x1xf32>
    %98 = vector.broadcast %97 : vector<1x1xf32> to vector<1x128xf32>
    %cst_51 = arith.constant 0.000000e+00 : f32
    %99 = vector.broadcast %cst_51 : f32 to vector<1x128xf32>
    %100 = arith.select %96, %98, %99 : vector<1x128xi1>, vector<1x128xf32>
    %101 = arith.addf %94, %100 : vector<1x128xf32>
    %c2_i32 = arith.constant 2 : i32
    %102 = vector.broadcast %c2_i32 : i32 to vector<1x128xi32>
    %103 = arith.cmpi eq, %86, %102 : vector<1x128xi32>
    %104 = vector.shape_cast %47 : vector<1x1xf32> to vector<1x1xf32>
    %105 = vector.broadcast %104 : vector<1x1xf32> to vector<1x128xf32>
    %cst_52 = arith.constant 0.000000e+00 : f32
    %106 = vector.broadcast %cst_52 : f32 to vector<1x128xf32>
    %107 = arith.select %103, %105, %106 : vector<1x128xi1>, vector<1x128xf32>
    %108 = arith.addf %101, %107 : vector<1x128xf32>
    %c3_i32 = arith.constant 3 : i32
    %109 = vector.broadcast %c3_i32 : i32 to vector<1x128xi32>
    %110 = arith.cmpi eq, %86, %109 : vector<1x128xi32>
    %111 = vector.shape_cast %53 : vector<1x1xf32> to vector<1x1xf32>
    %112 = vector.broadcast %111 : vector<1x1xf32> to vector<1x128xf32>
    %cst_53 = arith.constant 0.000000e+00 : f32
    %113 = vector.broadcast %cst_53 : f32 to vector<1x128xf32>
    %114 = arith.select %110, %112, %113 : vector<1x128xi1>, vector<1x128xf32>
    %115 = arith.addf %108, %114 : vector<1x128xf32>
    %c4_i32 = arith.constant 4 : i32
    %116 = vector.broadcast %c4_i32 : i32 to vector<1x128xi32>
    %117 = arith.cmpi eq, %86, %116 : vector<1x128xi32>
    %118 = vector.shape_cast %57 : vector<1x1xf32> to vector<1x1xf32>
    %119 = vector.broadcast %118 : vector<1x1xf32> to vector<1x128xf32>
    %cst_54 = arith.constant 0.000000e+00 : f32
    %120 = vector.broadcast %cst_54 : f32 to vector<1x128xf32>
    %121 = arith.select %117, %119, %120 : vector<1x128xi1>, vector<1x128xf32>
    %122 = arith.addf %115, %121 : vector<1x128xf32>
    %c5_i32 = arith.constant 5 : i32
    %123 = vector.broadcast %c5_i32 : i32 to vector<1x128xi32>
    %124 = arith.cmpi eq, %86, %123 : vector<1x128xi32>
    %125 = vector.shape_cast %63 : vector<1x1xf32> to vector<1x1xf32>
    %126 = vector.broadcast %125 : vector<1x1xf32> to vector<1x128xf32>
    %cst_55 = arith.constant 0.000000e+00 : f32
    %127 = vector.broadcast %cst_55 : f32 to vector<1x128xf32>
    %128 = arith.select %124, %126, %127 : vector<1x128xi1>, vector<1x128xf32>
    %129 = arith.addf %122, %128 : vector<1x128xf32>
    %c6_i32 = arith.constant 6 : i32
    %130 = vector.broadcast %c6_i32 : i32 to vector<1x128xi32>
    %131 = arith.cmpi eq, %86, %130 : vector<1x128xi32>
    %132 = vector.shape_cast %69 : vector<1x1xf32> to vector<1x1xf32>
    %133 = vector.broadcast %132 : vector<1x1xf32> to vector<1x128xf32>
    %cst_56 = arith.constant 0.000000e+00 : f32
    %134 = vector.broadcast %cst_56 : f32 to vector<1x128xf32>
    %135 = arith.select %131, %133, %134 : vector<1x128xi1>, vector<1x128xf32>
    %136 = arith.addf %129, %135 : vector<1x128xf32>
    %c7_i32 = arith.constant 7 : i32
    %137 = vector.broadcast %c7_i32 : i32 to vector<1x128xi32>
    %138 = arith.cmpi eq, %86, %137 : vector<1x128xi32>
    %139 = vector.shape_cast %77 : vector<1x1xf32> to vector<1x1xf32>
    %140 = vector.broadcast %139 : vector<1x1xf32> to vector<1x128xf32>
    %cst_57 = arith.constant 0.000000e+00 : f32
    %141 = vector.broadcast %cst_57 : f32 to vector<1x128xf32>
    %142 = arith.select %138, %140, %141 : vector<1x128xi1>, vector<1x128xf32>
    %143 = arith.addf %136, %142 : vector<1x128xf32>
    %c8_i32 = arith.constant 8 : i32
    %144 = vector.broadcast %c8_i32 : i32 to vector<1x128xi32>
    %145 = arith.cmpi eq, %86, %144 : vector<1x128xi32>
    %146 = vector.shape_cast %85 : vector<1x1xf32> to vector<1x1xf32>
    %147 = vector.broadcast %146 : vector<1x1xf32> to vector<1x128xf32>
    %cst_58 = arith.constant 0.000000e+00 : f32
    %148 = vector.broadcast %cst_58 : f32 to vector<1x128xf32>
    %149 = arith.select %145, %147, %148 : vector<1x128xi1>, vector<1x128xf32>
    %150 = arith.addf %143, %149 : vector<1x128xf32>
    %151 = vector.shape_cast %150 : vector<1x128xf32> to vector<1x128xf32>
    %152 = vector.broadcast %151 : vector<1x128xf32> to vector<8x128xf32>
    %c0_59 = arith.constant 0 : index
    %c0_60 = arith.constant 0 : index
    %153 = vector.load %arg3[%c0_59, %c0_60] : memref<8x128xf32, #tpu.memory_space<vmem>>, vector<8x128xf32>
    tpu.vector_store %arg3[%c0_59, %c0_60], %152 {strides = array<i32>} : memref<8x128xf32, #tpu.memory_space<vmem>>, vector<8x128xf32>,
    return
  }
  func.func @transform_0(%arg0: i32) -> (i32, i32) {
    %c0_i32 = arith.constant 0 : i32
    %c0_i32_0 = arith.constant 0 : i32
    %c0_i32_1 = arith.constant 0 : i32
    return %c0_i32, %c0_i32_0 : i32, i32
  }
  func.func @transform_1(%arg0: i32) -> (i32, i32) {
    %c0_i32 = arith.constant 0 : i32
    %c0_i32_0 = arith.constant 0 : i32
    %c0_i32_1 = arith.constant 0 : i32
    return %c0_i32, %c0_i32_0 : i32, i32
  }
  func.func @transform_2(%arg0: i32) -> (i32, i32) {
    %c0_i32 = arith.constant 0 : i32
    %c0_i32_0 = arith.constant 0 : i32
    return %arg0, %c0_i32 : i32, i32
  }
}

</mosaic_0001>

<bundles_post_ra>
// kernel: tpu_custom_call.1
= control target key start
LH: loop header
LB: loop body
LE: loop exit
PB: predicated region body
PF: predicated region fallthrough
CT: control target
= control target key end

     0   :  { %7 = vsyncpa [#allocation3], 0  ;;  %vm47_vm0 = vcmask 261120   ;;  %v564_v16 = vlaneseq  ;;  %v3145_v50 = vmov -3.0   ;;  %v3147_v51 = vmov -3.0   ;;  %s3860_s0 = inlined_call_operand.vmem [shape: f32[64,32], index: 0, kind: input, shape index: {}]   ;;  %s3861_s1 = inlined_call_operand.vmem [shape: f32[64,32], index: 1, kind: input, shape index: {}]   ;;  %s3862_s2 = inlined_call_operand.hbm [shape: f32[8,128], index: 2, kind: output, shape index: {}]  }
   0x1   :  { %v2810_v0 = vld [vmem:[%s3860_s0 + $0x38] sm:$0xff]  ;;  %v2824_v2 = vld [vmem:[%s3860_s0 + $0x30] sm:$0xff]  ;;  %v2842_v4 = vld [vmem:[%s3860_s0 + $0x28] sm:$0xff]  ;;  %v3149_v52 = vmov -3.0   ;;  %v3151_v53 = vmov -3.0   ;;  %v3153_v54 = vmov -3.0  }
   0x2   :  { %3877 = vst [vmem:[#allocation5_spill] sm:$0xff] %v2810_v0  ;;  %v2815_v1 = vld [vmem:[%s3861_s1 + $0x38] sm:$0xff]  ;;  %1728 = vmatprep.subr.msk.mxu0 %vm47_vm0, %v2810_v0  ;;  %3879 = vst [vmem:[#allocation7_spill] sm:$0xff] %v2824_v2  ;;  %v2829_v3 = vld [vmem:[%s3861_s1 + $0x30] sm:$0xff]  ;;  %v3079_v17 = vand.u32 127, %v564_v16  ;;  %v3155_v55 = vmov -3.0  }
   0x3   :  { %3878 = vst [vmem:[#allocation6_spill] sm:$0xff] %v2815_v1  ;;  %1756 = vmatprep.subr.msk.mxu1 %vm47_vm0, %v2815_v1  ;;  %3880 = vst [vmem:[#allocation8_spill] sm:$0xff] %v2829_v3  ;;  %1729 = vmatpush3.xpose.msk.msra.mxu0 %vm47_vm0, %v2810_v0  ;;  %v2847_v5 = vld [vmem:[%s3861_s1 + $0x28] sm:$0xff]  ;;  %v2860_v6 = vld [vmem:[%s3860_s0] sm:$0xff]  ;;  %v3157_v56 = vmov -3.0   ;;  %v3159_v57 = vmov -3.0  }
   0x4   :  { %1757 = vmatpush3.xpose.msk.msra.mxu1 %vm47_vm0, %v2815_v1  ;;  %1730 = vmatprep.subr.msk.mxu0 %vm47_vm0, %v2824_v2  ;;  %3881 = vst [vmem:[#allocation9_spill] sm:$0xff] %v2842_v4  ;;  %3882 = vst [vmem:[#allocation10_spill] sm:$0xff] %v2847_v5  ;;  %v2865_v7 = vld [vmem:[%s3861_s1] sm:$0xff]  ;;  %v2892_v10 = vld [vmem:[%s3860_s0 + $0x18] sm:$0xff] }
   0x5   :  { %1758 = vmatprep.subr.msk.mxu1 %vm47_vm0, %v2829_v3  ;;  %v2870_v8 = vld [vmem:[%s3860_s0 + $0x20] sm:$0xff]  ;;  %1744 = vmatprep.mubr.msk.f32.mxu0 %vm47_vm0, %v2860_v6  ;;  %3885 = vst [vmem:[#allocation13_spill] sm:$0xff] %v2892_v10  ;;  %v2897_v11 = vld [vmem:[%s3861_s1 + $0x18] sm:$0xff]  ;;  %v2910_v12 = vld [vmem:[%s3860_s0 + $0x10] sm:$0xff] }
   0x6   :  { %3883 = vst [vmem:[#allocation11_spill] sm:$0xff] %v2870_v8  ;;  %v2875_v9 = vld [vmem:[%s3861_s1 + $0x20] sm:$0xff]  ;;  %1772 = vmatprep.mubr.msk.f32.mxu1 %vm47_vm0, %v2865_v7  ;;  %3886 = vst [vmem:[#allocation14_spill] sm:$0xff] %v2897_v11  ;;  %v2915_v13 = vld [vmem:[%s3861_s1 + $0x10] sm:$0xff] }
   0x7   :  { %1731 = vmatpush3.xpose.msk.msra.mxu0 %vm47_vm0, %v2824_v2  ;;  %3884 = vst [vmem:[#allocation12_spill] sm:$0xff] %v2875_v9  ;;  %3887 = vst [vmem:[#allocation15_spill] sm:$0xff] %v2915_v13  ;;  %v2928_v14 = vld [vmem:[%s3860_s0 + $0x8] sm:$0xff]  ;;  %s3185_s0 = smov 0  }
   0x8   :  { %1759 = vmatpush3.xpose.msk.msra.mxu1 %vm47_vm0, %v2829_v3  ;;  %1732 = vmatprep.subr.msk.mxu0 %vm47_vm0, %v2842_v4  ;;  %v2933_v15 = vld [vmem:[%s3861_s1 + $0x8] sm:$0xff]  ;;  %3889 = vst [vmem:[#allocation17_spill] sm:$0xff] %v3079_v17 }
   0x9   :  { %1760 = vmatprep.subr.msk.mxu1 %vm47_vm0, %v2847_v5  ;;  %3888 = vst [vmem:[#allocation16_spill] sm:$0xff] %v2933_v15 }
   0xb   :  { %1733 = vmatpush3.xpose.msk.msra.mxu0 %vm47_vm0, %v2842_v4 }
   0xc   :  { %1761 = vmatpush3.xpose.msk.msra.mxu1 %vm47_vm0, %v2847_v5  ;;  %1734 = vmatprep.subr.msk.mxu0 %vm47_vm0, %v2870_v8 }
   0xd   :  { %1762 = vmatprep.subr.msk.mxu1 %vm47_vm0, %v2875_v9 }
   0xf   :  { %1735 = vmatpush3.xpose.msk.msra.mxu0 %vm47_vm0, %v2870_v8 }
  0x10   :  { %1763 = vmatpush3.xpose.msk.msra.mxu1 %vm47_vm0, %v2875_v9  ;;  %1736 = vmatprep.subr.msk.mxu0 %vm47_vm0, %v2892_v10 }
  0x11   :  { %1764 = vmatprep.subr.msk.mxu1 %vm47_vm0, %v2897_v11 }
  0x13   :  { %1737 = vmatpush3.xpose.msk.msra.mxu0 %vm47_vm0, %v2892_v10 }
  0x14   :  { %1765 = vmatpush3.xpose.msk.msra.mxu1 %vm47_vm0, %v2897_v11  ;;  %1738 = vmatprep.subr.msk.mxu0 %vm47_vm0, %v2910_v12 }
  0x15   :  { %1766 = vmatprep.subr.msk.mxu1 %vm47_vm0, %v2915_v13 }
  0x17   :  { %1739 = vmatpush3.xpose.msk.msra.mxu0 %vm47_vm0, %v2910_v12 }
  0x18   :  { %1767 = vmatpush3.xpose.msk.msra.mxu1 %vm47_vm0, %v2915_v13  ;;  %1740 = vmatprep.subr.msk.mxu0 %vm47_vm0, %v2928_v14 }
  0x19   :  { %1768 = vmatprep.subr.msk.mxu1 %vm47_vm0, %v2933_v15 }
  0x1b   :  { %1741 = vmatpush3.xpose.msk.msra.mxu0 %vm47_vm0, %v2928_v14 }
  0x1c   :  { %1769 = vmatpush3.xpose.msk.msra.mxu1 %vm47_vm0, %v2933_v15  ;;  %1742 = vmatprep.subr.msk.mxu0 %vm47_vm0, %v2860_v6 }
  0x1d   :  { %1770 = vmatprep.subr.msk.mxu1 %vm47_vm0, %v2865_v7 }
  0x1f   :  { %1743 = vmatpush3.xpose.msk.msra.mxu0 %vm47_vm0, %v2860_v6 }
  0x20   :  { %1771 = vmatpush3.xpose.msk.msra.mxu1 %vm47_vm0, %v2865_v7  ;;  %1784 = vmatprep.subr.msk.mxu0 %vm47_vm0, %v2815_v1 }
  0x21   :  { %1812 = vmatprep.subr.msk.mxu1 %vm47_vm0, %v2810_v0 }
  0x22   :  { %1745 = vmatmul.mubr.msk.f32.vlgmr.msra.gmra.mxu0 %vm47_vm0, %v2928_v14 }
  0x23   :  { %1773 = vmatmul.mubr.msk.f32.vlgmr.msra.gmra.mxu1 %vm47_vm0, %v2933_v15  ;;  %1785 = vmatpush3.xpose.msk.msra.mxu0 %vm47_vm0, %v2815_v1 }
  0x24   :  { %1813 = vmatpush3.xpose.msk.msra.mxu1 %vm47_vm0, %v2810_v0  ;;  %1786 = vmatprep.subr.msk.mxu0 %vm47_vm0, %v2829_v3 }
  0x25   :  { %1814 = vmatprep.subr.msk.mxu1 %vm47_vm0, %v2824_v2  ;;  %1747 = vmatprep.mubr.msk.f32.mxu0 %vm47_vm0, %v2910_v12 }
  0x26   :  { %1775 = vmatprep.mubr.msk.f32.mxu1 %vm47_vm0, %v2915_v13  ;;  %1748 = vmatmul.mubr.msk.f32.gmra.mxu0 %vm47_vm0, %v2892_v10 }
  0x27   :  { %1776 = vmatmul.mubr.msk.f32.gmra.mxu1 %vm47_vm0, %v2897_v11  ;;  %1787 = vmatpush3.xpose.msk.msra.mxu0 %vm47_vm0, %v2829_v3 }
  0x28   :  { %1815 = vmatpush3.xpose.msk.msra.mxu1 %vm47_vm0, %v2824_v2  ;;  %1788 = vmatprep.subr.msk.mxu0 %vm47_vm0, %v2847_v5 }
  0x29   :  { %1816 = vmatprep.subr.msk.mxu1 %vm47_vm0, %v2842_v4  ;;  %1750 = vmatprep.mubr.msk.f32.mxu0 %vm47_vm0, %v2870_v8 }
  0x2a   :  { %1778 = vmatprep.mubr.msk.f32.mxu1 %vm47_vm0, %v2875_v9  ;;  %1751 = vmatmul.mubr.msk.f32.gmra.mxu0 %vm47_vm0, %v2842_v4 }
  0x2b   :  { %1779 = vmatmul.mubr.msk.f32.gmra.mxu1 %vm47_vm0, %v2847_v5  ;;  %1789 = vmatpush3.xpose.msk.msra.mxu0 %vm47_vm0, %v2847_v5 }
  0x2c   :  { %1817 = vmatpush3.xpose.msk.msra.mxu1 %vm47_vm0, %v2842_v4  ;;  %1790 = vmatprep.subr.msk.mxu0 %vm47_vm0, %v2875_v9 }
  0x2d   :  { %1818 = vmatprep.subr.msk.mxu1 %vm47_vm0, %v2870_v8  ;;  %1753 = vmatprep.mubr.msk.f32.mxu0 %vm47_vm0, %v2824_v2 }
  0x2e   :  { %1781 = vmatprep.mubr.msk.f32.mxu1 %vm47_vm0, %v2829_v3  ;;  %1754 = vmatmul.mubr.msk.f32.gmra.mxu0 %vm47_vm0, %v2810_v0 }
  0x2f   :  { %1782 = vmatmul.mubr.msk.f32.gmra.mxu1 %vm47_vm0, %v2815_v1  ;;  %1791 = vmatpush3.xpose.msk.msra.mxu0 %vm47_vm0, %v2875_v9 }
  0x30   :  { %1819 = vmatpush3.xpose.msk.msra.mxu1 %vm47_vm0, %v2870_v8  ;;  %1792 = vmatprep.subr.msk.mxu0 %vm47_vm0, %v2897_v11 }
  0x31   :  { %1820 = vmatprep.subr.msk.mxu1 %vm47_vm0, %v2892_v10  ;;  %1800 = vmatprep.mubr.msk.f32.mxu0 %vm47_vm0, %v2860_v6 }
  0x32   :  { %1828 = vmatprep.mubr.msk.f32.mxu1 %vm47_vm0, %v2865_v7 }
  0x33   :  { %1793 = vmatpush3.xpose.msk.msra.mxu0 %vm47_vm0, %v2897_v11 }
  0x34   :  { %1821 = vmatpush3.xpose.msk.msra.mxu1 %vm47_vm0, %v2892_v10  ;;  %1794 = vmatprep.subr.msk.mxu0 %vm47_vm0, %v2915_v13 }
  0x35   :  { %1822 = vmatprep.subr.msk.mxu1 %vm47_vm0, %v2910_v12 }
  0x37   :  { %1795 = vmatpush3.xpose.msk.msra.mxu0 %vm47_vm0, %v2915_v13 }
  0x38   :  { %1823 = vmatpush3.xpose.msk.msra.mxu1 %vm47_vm0, %v2910_v12  ;;  %1796 = vmatprep.subr.msk.mxu0 %vm47_vm0, %v2933_v15 }
  0x39   :  { %1824 = vmatprep.subr.msk.mxu1 %vm47_vm0, %v2928_v14 }
  0x3b   :  { %1797 = vmatpush3.xpose.msk.msra.mxu0 %vm47_vm0, %v2933_v15 }
  0x3c   :  { %1825 = vmatpush3.xpose.msk.msra.mxu1 %vm47_vm0, %v2928_v14  ;;  %1798 = vmatprep.subr.msk.mxu0 %vm47_vm0, %v2865_v7 }
  0x3d   :  { %1826 = vmatprep.subr.msk.mxu1 %vm47_vm0, %v2860_v6 }
  0x3f   :  { %1799 = vmatpush3.xpose.msk.msra.mxu0 %vm47_vm0, %v2865_v7 }
  0x40   :  { %1827 = vmatpush3.xpose.msk.msra.mxu1 %vm47_vm0, %v2860_v6 }
  0x42   :  { %1801 = vmatmul.mubr.msk.f32.vlgmr.msra.gmra.mxu0 %vm47_vm0, %v2928_v14 }
  0x43   :  { %1829 = vmatmul.mubr.msk.f32.vlgmr.msra.gmra.mxu1 %vm47_vm0, %v2933_v15  ;;  %1803 = vmatprep.mubr.msk.f32.mxu0 %vm47_vm0, %v2910_v12 }
  0x44   :  { %1831 = vmatprep.mubr.msk.f32.mxu1 %vm47_vm0, %v2915_v13 }
  0x46   :  { %1804 = vmatmul.mubr.msk.f32.gmra.mxu0 %vm47_vm0, %v2892_v10 }
  0x47   :  { %1832 = vmatmul.mubr.msk.f32.gmra.mxu1 %vm47_vm0, %v2897_v11  ;;  %1806 = vmatprep.mubr.msk.f32.mxu0 %vm47_vm0, %v2870_v8 }
  0x48   :  { %1834 = vmatprep.mubr.msk.f32.mxu1 %vm47_vm0, %v2875_v9 }
  0x4a   :  { %1807 = vmatmul.mubr.msk.f32.gmra.mxu0 %vm47_vm0, %v2842_v4 }
  0x4b   :  { %1835 = vmatmul.mubr.msk.f32.gmra.mxu1 %vm47_vm0, %v2847_v5  ;;  %1809 = vmatprep.mubr.msk.f32.mxu0 %vm47_vm0, %v2824_v2 }
  0x4c   :  { %1837 = vmatprep.mubr.msk.f32.mxu1 %vm47_vm0, %v2829_v3 }
  0x4e   :  { %1810 = vmatmul.mubr.msk.f32.gmra.mxu0 %vm47_vm0, %v2810_v0 }
  0x4f   :  { %1838 = vmatmul.mubr.msk.f32.gmra.mxu1 %vm47_vm0, %v2815_v1 }
  0xe2   :  { %v3081_v18 = vpop.f32.mrf.mxu0  }
  0xe3   :  { %v3083_v19 = vpop.f32.mrf.mxu1   ;;  %v3902_v16 = vmov %v3081_v18 }
  0xe4   :  { %v3085_v20 = vpop.f32.mrf.mxu0  }
  0xe5   :  { %v3087_v21 = vpop.f32.mrf.mxu1   ;;  %v3903_v1 = vmov %v3085_v20 }
  0xe6   :  { %v3089_v22 = vpop.f32.mrf.mxu0  }
  0xe7   :  { %v3091_v23 = vpop.f32.mrf.mxu1   ;;  %v3900_v62 = vmov %v3089_v22 }
  0xe8   :  { %v3093_v24 = vpop.f32.mrf.mxu0  }
  0xe9   :  { %v3095_v25 = vpop.f32.mrf.mxu1   ;;  %v3901_v63 = vmov %v3093_v24 }
  0xea   :  { %v3097_v26 = vpop.f32.mrf.mxu0  }
  0xeb   :  { %v3099_v27 = vpop.f32.mrf.mxu1   ;;  %v3898_v60 = vmov %v3097_v26 }
  0xec   :  { %v3101_v28 = vpop.f32.mrf.mxu0  }
  0xed   :  { %v3103_v29 = vpop.f32.mrf.mxu1   ;;  %v3899_v61 = vmov %v3101_v28 }
  0xee   :  { %v3105_v30 = vpop.f32.mrf.mxu0  }
  0xef   :  { %v3107_v31 = vpop.f32.mrf.mxu1   ;;  %v3896_v58 = vmov %v3105_v30 }
  0xf0   :  { %v3109_v32 = vpop.f32.mrf.mxu0  }
  0xf1   :  { %v3111_v33 = vpop.f32.mrf.mxu1   ;;  %v3897_v59 = vmov %v3109_v32 }
 0x102   :  { %v3113_v34 = vpop.f32.mrf.mxu0 }
 0x103   :  { %v3115_v35 = vpop.f32.mrf.mxu1 }
 0x104   :  { %v3117_v36 = vpop.f32.mrf.mxu0 }
 0x105   :  { %v3119_v37 = vpop.f32.mrf.mxu1 }
 0x106   :  { %v3121_v38 = vpop.f32.mrf.mxu0 }
 0x107   :  { %v3123_v39 = vpop.f32.mrf.mxu1 }
 0x108   :  { %v3125_v40 = vpop.f32.mrf.mxu0 }
 0x109   :  { %v3127_v41 = vpop.f32.mrf.mxu1 }
 0x10a   :  { %v3129_v42 = vpop.f32.mrf.mxu0 }
 0x10b   :  { %v3131_v43 = vpop.f32.mrf.mxu1 }
 0x10c   :  { %3890 = vst [vmem:[#allocation18_spill] sm:$0xff] %v3131_v43  ;;  %v3133_v44 = vpop.f32.mrf.mxu0 }
 0x10d   :  { %v3135_v45 = vpop.f32.mrf.mxu1 }
 0x10e   :  { %3891 = vst [vmem:[#allocation19_spill] sm:$0xff] %v3135_v45  ;;  %v3137_v46 = vpop.f32.mrf.mxu0 }
 0x10f   :  { %3892 = vst [vmem:[#allocation20_spill] sm:$0xff] %v3137_v46  ;;  %v3139_v47 = vpop.f32.mrf.mxu1 }
 0x110   :  { %3893 = vst [vmem:[#allocation21_spill] sm:$0xff] %v3139_v47  ;;  %v3141_v48 = vpop.f32.mrf.mxu0 }
 0x111   :  { %3894 = vst [vmem:[#allocation22_spill] sm:$0xff] %v3141_v48  ;;  %v3143_v49 = vpop.f32.mrf.mxu1 }
 0x112   :  { %3895 = vst [vmem:[#allocation23_spill] sm:$0xff] %v3143_v49 }
 0x113 LB: > { %vm588_vm1 = vcmask 523264   ;;  %s2649_s0 = sphi %s3185_s0, %s571_s0   ;;  %v2645_v1 = vphi %v3903_v1, %v631_v1   ;;  %v2641_v16 = vphi %v3902_v16, %v632_v16   ;;  %v2637_v63 = vphi %v3901_v63, %v633_v63   ;;  %v2633_v62 = vphi %v3900_v62, %v634_v62   ;;  %v2629_v61 = vphi %v3899_v61, %v635_v61   ;;  %v2625_v60 = vphi %v3898_v60, %v636_v60   ;;  %v2621_v59 = vphi %v3897_v59, %v637_v59   ;;  %v2617_v58 = vphi %v3896_v58, %v638_v58   ;;  %v2613_v57 = vphi %v3159_v57, %v3914_v57   ;;  %v2609_v56 = vphi %v3157_v56, %v3913_v56   ;;  %v2605_v55 = vphi %v3155_v55, %v3912_v55   ;;  %v2601_v54 = vphi %v3153_v54, %v3911_v54   ;;  %v2597_v53 = vphi %v3151_v53, %v3910_v53   ;;  %v2593_v52 = vphi %v3149_v52, %v3909_v52   ;;  %v2589_v51 = vphi %v3147_v51, %v3908_v51   ;;  %v2585_v50 = vphi %v3145_v50, %v3907_v50  }
 0x114   : > { %v589_v3 = vsel %vm588_vm1, %v2645_v1, -inf  ;;  %v595_v47 = vsel %vm588_vm1, %v2637_v63, -inf  ;;  %v592_v5 = vsel %vm588_vm1, %v2641_v16, -inf  ;;  %v598_v0 = vsel %vm588_vm1, %v2633_v62, -inf }
 0x115   : > { %590 = vmax.xlane.f32.xlu0 %v589_v3  ;;  %596 = vmax.xlane.f32.xlu1 %v595_v47  ;;  %v601_v2 = vsel %vm588_vm1, %v2629_v61, -inf  ;;  %v604_v4 = vsel %vm588_vm1, %v2625_v60, -inf  ;;  %v607_v9 = vsel %vm588_vm1, %v2621_v59, -inf  ;;  %v610_v49 = vsel %vm588_vm1, %v2617_v58, -inf }
 0x116   : > { %v613_v3 = vstv %s2649_s0  ;;  %s571_s0 = sadd.s32 1, %s2649_s0  }
 0x117   : > { %vm3218_vm2 = vcmp.eq.s32.totalorder %v3079_v17, %v613_v3  ;;  %p3240_p0 = scmp.ge.s32.totalorder %s571_s0, 30  }
 0x118   :  { %s3296_s13 = smov (%p3240_p0), 0  }
 0x119   : > { %593 = vmax.xlane.f32.xlu0 %v592_v5  ;;  %599 = vmax.xlane.f32.xlu1 %v598_v0 }
 0x11d   : > { %602 = vmax.xlane.f32.xlu0 %v601_v2  ;;  %605 = vmax.xlane.f32.xlu1 %v604_v4 }
 0x121   : > { %608 = vmax.xlane.f32.xlu0 %v607_v9  ;;  %611 = vmax.xlane.f32.xlu1 %v610_v49 }
 0x19e   : > { %v591_v5 = vpop.xlane.xlu0 %590  ;;  %v597_v0 = vpop.xlane.xlu1 %596 }
 0x19f   : > { %v615_v8 = vsel %vm3218_vm2, %v591_v5, %v2613_v57   ;;  %vm623_vm3 = vcmp.ge.f32.partialorder %v2645_v1, %v591_v5  ;;  %v617_v2 = vsel %vm3218_vm2, %v597_v0, %v2605_v55   ;;  %vm625_vm4 = vcmp.ge.f32.partialorder %v2637_v63, %v597_v0 }
 0x1a0   : > { %v631_v1 = vsel %vm623_vm3, -3.0, %v2645_v1   ;;  %v633_v63 = vsel %vm625_vm4, -3.0, %v2637_v63  }
 0x1a2   : > { %v594_v4 = vpop.xlane.xlu0 %593  ;;  %v600_v9 = vpop.xlane.xlu1 %599 }
 0x1a3   : > { %v616_v49 = vsel %vm3218_vm2, %v594_v4, %v2609_v56   ;;  %vm624_vm5 = vcmp.ge.f32.partialorder %v2641_v16, %v594_v4  ;;  %v618_v3 = vsel %vm3218_vm2, %v600_v9, %v2601_v54   ;;  %vm626_vm6 = vcmp.ge.f32.partialorder %v2633_v62, %v600_v9 }
 0x1a4   : > { %v632_v16 = vsel %vm624_vm5, -3.0, %v2641_v16   ;;  %v634_v62 = vsel %vm626_vm6, -3.0, %v2633_v62   ;;  %v3911_v54 = vmov %v618_v3 }
 0x1a6   : > { %v603_v57 = vpop.xlane.xlu0 %602  ;;  %v606_v5 = vpop.xlane.xlu1 %605 }
 0x1a7   : > { %v619_v43 = vsel %vm3218_vm2, %v603_v57, %v2597_v53   ;;  %vm627_vm7 = vcmp.ge.f32.partialorder %v2629_v61, %v603_v57  ;;  %v620_v0 = vsel %vm3218_vm2, %v606_v5, %v2593_v52   ;;  %vm628_vm8 = vcmp.ge.f32.partialorder %v2625_v60, %v606_v5 }
 0x1a8   : > { %v635_v61 = vsel %vm627_vm7, -3.0, %v2629_v61   ;;  %v636_v60 = vsel %vm628_vm8, -3.0, %v2625_v60   ;;  %v3909_v52 = vmov %v620_v0  ;;  %v3910_v53 = vmov %v619_v43 }
 0x1a9   : > { %v3914_v57 = vmov %v615_v8  ;;  %570 = sbr.rel (!%p3240_p0) target bundleno = 275 (0x113), region = 58 }
 0x1aa   : > { %v609_v55 = vpop.xlane.xlu0 %608  ;;  %v612_v56 = vpop.xlane.xlu1 %611 }
 0x1ab   : > { %v621_v4 = vsel %vm3218_vm2, %v609_v55, %v2589_v51   ;;  %vm629_vm9 = vcmp.ge.f32.partialorder %v2621_v59, %v609_v55  ;;  %v622_v9 = vsel %vm3218_vm2, %v612_v56, %v2585_v50   ;;  %vm630_vm10 = vcmp.ge.f32.partialorder %v2617_v58, %v612_v56 }
 0x1ac   : > { %v637_v59 = vsel %vm629_vm9, -3.0, %v2621_v59   ;;  %v638_v58 = vsel %vm630_vm10, -3.0, %v2617_v58   ;;  %v3907_v50 = vmov %v622_v9  ;;  %v3908_v51 = vmov %v621_v4 }
 0x1ad   : > { %v3912_v55 = vmov %v617_v2  ;;  %v3913_v56 = vmov %v616_v49 }
 0x1ae LB: > { %v661_v1 = vsel %vm47_vm0, %v2681_v8, -inf  ;;  %v667_v50 = vsel %vm47_vm0, %v2673_v2, -inf  ;;  %v664_v51 = vsel %vm47_vm0, %v2677_v49, -inf  ;;  %v670_v52 = vsel %vm47_vm0, %v2669_v3, -inf  ;;  %s644_s13 = sadd.s32 1, %s2685_s13   ;;  %s2685_s13 = sphi %s3296_s13, %s644_s13   ;;  %v2681_v8 = vphi %v615_v8, %v693_v8   ;;  %v2677_v49 = vphi %v616_v49, %v694_v49   ;;  %v2673_v2 = vphi %v617_v2, %v695_v2   ;;  %v2669_v3 = vphi %v618_v3, %v696_v3   ;;  %v2665_v43 = vphi %v619_v43, %v697_v43   ;;  %v2661_v0 = vphi %v620_v0, %v698_v0   ;;  %v2657_v4 = vphi %v621_v4, %v699_v4   ;;  %v2653_v9 = vphi %v622_v9, %v700_v9  }
 0x1af   : > { %662 = vmax.xlane.f32.xlu0 %v661_v1  ;;  %668 = vmax.xlane.f32.xlu1 %v667_v50  ;;  %v673_v53 = vsel %vm47_vm0, %v2665_v43, -inf  ;;  %v676_v54 = vsel %vm47_vm0, %v2661_v0, -inf  ;;  %v679_v58 = vsel %vm47_vm0, %v2657_v4, -inf  ;;  %v682_v59 = vsel %vm47_vm0, %v2653_v9, -inf  ;;  %p641_p1 = scmp.ge.s32.totalorder %s644_s13, 30  }
 0x1b0   :  { %v3360_v55 = vmov (%p641_p1), -3.0   ;;  %v3362_v56 = vmov (%p641_p1), -3.0   ;;  %v3364_v1 = vmov (%p641_p1), -3.0   ;;  %v3366_v50 = vmov (%p641_p1), -3.0   ;;  %s3400_s14 = smov (%p641_p1), 0  }
 0x1b3   : > { %665 = vmax.xlane.f32.xlu0 %v664_v51  ;;  %671 = vmax.xlane.f32.xlu1 %v670_v52  ;;  %v3368_v51 = vmov (%p641_p1), -3.0   ;;  %v3370_v52 = vmov (%p641_p1), -3.0  }
 0x1b7   : > { %674 = vmax.xlane.f32.xlu0 %v673_v53  ;;  %677 = vmax.xlane.f32.xlu1 %v676_v54  ;;  %v3372_v53 = vmov (%p641_p1), -3.0   ;;  %v3374_v54 = vmov (%p641_p1), -3.0  }
 0x1bb   : > { %680 = vmax.xlane.f32.xlu0 %v679_v58  ;;  %683 = vmax.xlane.f32.xlu1 %v682_v59 }
 0x238   : > { %v3317_v60 = vpop.xlane.xlu0 %662  ;;  %v3319_v61 = vpop.xlane.xlu1 %668 }
 0x239   : > { %vm685_vm11 = vcmp.ge.f32.partialorder %v2681_v8, %v3317_v60  ;;  %vm687_vm12 = vcmp.ge.f32.partialorder %v2673_v2, %v3319_v61 }
 0x23a   : > { %v693_v8 = vsel %vm685_vm11, -3.0, %v2681_v8   ;;  %v695_v2 = vsel %vm687_vm12, -3.0, %v2673_v2  }
 0x23b   :  { %v3915_v8 = vmov (%p641_p1), %v3107_v31  ;;  %v3917_v2 = vmov (%p641_p1), %v3099_v27 }
 0x23c   : > { %v3323_v62 = vpop.xlane.xlu0 %665  ;;  %v3325_v63 = vpop.xlane.xlu1 %671 }
 0x23d   : > { %vm686_vm13 = vcmp.ge.f32.partialorder %v2677_v49, %v3323_v62  ;;  %vm688_vm14 = vcmp.ge.f32.partialorder %v2669_v3, %v3325_v63 }
 0x23e   : > { %v694_v49 = vsel %vm686_vm13, -3.0, %v2677_v49   ;;  %v696_v3 = vsel %vm688_vm14, -3.0, %v2669_v3  }
 0x23f   :  { %v3918_v49 = vmov (%p641_p1), %v3103_v29  ;;  %v3919_v3 = vmov (%p641_p1), %v3091_v23 }
 0x240   : > { %v3329_v16 = vpop.xlane.xlu0 %674  ;;  %v3331_v47 = vpop.xlane.xlu1 %677 }
 0x241   : > { %vm689_vm15 = vcmp.ge.f32.partialorder %v2665_v43, %v3329_v16  ;;  %vm690_vm2 = vcmp.ge.f32.partialorder %v2661_v0, %v3331_v47 }
 0x242   : > { %v697_v43 = vsel %vm689_vm15, -3.0, %v2665_v43   ;;  %v698_v0 = vsel %vm690_vm2, -3.0, %v2661_v0   ;;  %643 = sbr.rel (!%p641_p1) target bundleno = 430 (0x1ae), region = 69 }
 0x243   :  { %v3916_v43 = vmov (%p641_p1), %v3111_v33  ;;  %v3920_v0 = vmov (%p641_p1), %v3095_v25 }
 0x244   : > { %v3335_v57 = vpop.xlane.xlu0 %680  ;;  %v3337_v5 = vpop.xlane.xlu1 %683 }
 0x245   : > { %vm691_vm3 = vcmp.ge.f32.partialorder %v2657_v4, %v3335_v57  ;;  %vm692_vm4 = vcmp.ge.f32.partialorder %v2653_v9, %v3337_v5 }
 0x246   : > { %v699_v4 = vsel %vm691_vm3, -3.0, %v2657_v4   ;;  %v700_v9 = vsel %vm692_vm4, -3.0, %v2653_v9  }
 0x247   :  { %v3921_v4 = vmov %v3083_v19  ;;  %v3922_v9 = vmov %v3087_v21 }
 0x248 LB: > { %v724_v58 = vsel %vm588_vm1, %v2749_v9, -inf  ;;  %v730_v59 = vsel %vm588_vm1, %v2741_v0, -inf  ;;  %v727_v11 = vsel %vm588_vm1, %v2745_v4, -inf  ;;  %v733_v46 = vsel %vm588_vm1, %v2737_v3, -inf  ;;  %v3923_v17 = vld [vmem:[#allocation17_spill] sm:$0xff]  ;;  %s2753_s14 = sphi %s3400_s14, %s706_s14   ;;  %v2749_v9 = vphi %v3922_v9, %v766_v9   ;;  %v2745_v4 = vphi %v3921_v4, %v767_v4   ;;  %v2741_v0 = vphi %v3920_v0, %v768_v0   ;;  %v2737_v3 = vphi %v3919_v3, %v769_v3   ;;  %v2733_v49 = vphi %v3918_v49, %v770_v49   ;;  %v2729_v2 = vphi %v3917_v2, %v771_v2   ;;  %v2725_v43 = vphi %v3916_v43, %v772_v43   ;;  %v2721_v8 = vphi %v3915_v8, %v773_v8   ;;  %v2717_v54 = vphi %v3374_v54, %v3934_v54   ;;  %v2713_v53 = vphi %v3372_v53, %v3933_v53   ;;  %v2709_v52 = vphi %v3370_v52, %v3932_v52   ;;  %v2705_v51 = vphi %v3368_v51, %v3931_v51   ;;  %v2701_v50 = vphi %v3366_v50, %v3930_v50   ;;  %v2697_v1 = vphi %v3364_v1, %v3929_v1   ;;  %v2693_v56 = vphi %v3362_v56, %v3928_v56   ;;  %v2689_v55 = vphi %v3360_v55, %v3927_v55  }
 0x249   : > { %725 = vmax.xlane.f32.xlu0 %v724_v58  ;;  %731 = vmax.xlane.f32.xlu1 %v730_v59  ;;  %v736_v45 = vsel %vm588_vm1, %v2733_v49, -inf  ;;  %v739_v48 = vsel %vm588_vm1, %v2729_v2, -inf  ;;  %v742_v13 = vsel %vm588_vm1, %v2725_v43, -inf  ;;  %v745_v10 = vsel %vm588_vm1, %v2721_v8, -inf }
 0x24a   : > { %v748_v58 = vstv %s2753_s14  ;;  %s706_s14 = sadd.s32 1, %s2753_s14  }
 0x24b   : > { %vm3433_vm5 = vcmp.eq.s32.totalorder %v3923_v17, %v748_v58  ;;  %p3455_p2 = scmp.ge.s32.totalorder %s706_s14, 30  }
 0x24c   :  { %s3511_s16 = smov (%p3455_p2), 0  }
 0x24d   : > { %728 = vmax.xlane.f32.xlu0 %v727_v11  ;;  %734 = vmax.xlane.f32.xlu1 %v733_v46 }
 0x251   : > { %737 = vmax.xlane.f32.xlu0 %v736_v45  ;;  %740 = vmax.xlane.f32.xlu1 %v739_v48 }
 0x255   : > { %743 = vmax.xlane.f32.xlu0 %v742_v13  ;;  %746 = vmax.xlane.f32.xlu1 %v745_v10 }
 0x2d2   : > { %v726_v11 = vpop.xlane.xlu0 %725  ;;  %v732_v46 = vpop.xlane.xlu1 %731 }
 0x2d3   : > { %v750_v15 = vsel %vm3433_vm5, %v726_v11, %v2717_v54   ;;  %vm758_vm6 = vcmp.ge.f32.partialorder %v2749_v9, %v726_v11  ;;  %v752_v45 = vsel %vm3433_vm5, %v732_v46, %v2709_v52   ;;  %vm760_vm7 = vcmp.ge.f32.partialorder %v2741_v0, %v732_v46 }
 0x2d4   : > { %v766_v9 = vsel %vm758_vm6, -3.0, %v2749_v9   ;;  %v768_v0 = vsel %vm760_vm7, -3.0, %v2741_v0  }
 0x2d6   : > { %v729_v13 = vpop.xlane.xlu0 %728  ;;  %v735_v10 = vpop.xlane.xlu1 %734 }
 0x2d7   : > { %v751_v48 = vsel %vm3433_vm5, %v729_v13, %v2713_v53   ;;  %vm759_vm8 = vcmp.ge.f32.partialorder %v2745_v4, %v729_v13  ;;  %v753_v58 = vsel %vm3433_vm5, %v735_v10, %v2705_v51   ;;  %vm761_vm9 = vcmp.ge.f32.partialorder %v2737_v3, %v735_v10 }
 0x2d8   : > { %v767_v4 = vsel %vm759_vm8, -3.0, %v2745_v4   ;;  %v769_v3 = vsel %vm761_vm9, -3.0, %v2737_v3   ;;  %v3931_v51 = vmov %v753_v58 }
 0x2da   : > { %v738_v54 = vpop.xlane.xlu0 %737  ;;  %v741_v11 = vpop.xlane.xlu1 %740 }
 0x2db   : > { %v754_v17 = vsel %vm3433_vm5, %v738_v54, %v2701_v50   ;;  %vm762_vm10 = vcmp.ge.f32.partialorder %v2733_v49, %v738_v54  ;;  %v755_v46 = vsel %vm3433_vm5, %v741_v11, %v2697_v1   ;;  %vm763_vm11 = vcmp.ge.f32.partialorder %v2729_v2, %v741_v11 }
 0x2dc   : > { %v770_v49 = vsel %vm762_vm10, -3.0, %v2733_v49   ;;  %v771_v2 = vsel %vm763_vm11, -3.0, %v2729_v2   ;;  %v3929_v1 = vmov %v755_v46  ;;  %v3930_v50 = vmov %v754_v17 }
 0x2dd   : > { %v3934_v54 = vmov %v750_v15  ;;  %705 = sbr.rel (!%p3455_p2) target bundleno = 584 (0x248), region = 80 }
 0x2de   : > { %v744_v52 = vpop.xlane.xlu0 %743  ;;  %v747_v53 = vpop.xlane.xlu1 %746 }
 0x2df   : > { %v756_v13 = vsel %vm3433_vm5, %v744_v52, %v2693_v56   ;;  %vm764_vm12 = vcmp.ge.f32.partialorder %v2725_v43, %v744_v52  ;;  %v757_v10 = vsel %vm3433_vm5, %v747_v53, %v2689_v55   ;;  %vm765_vm13 = vcmp.ge.f32.partialorder %v2721_v8, %v747_v53 }
 0x2e0   : > { %v772_v43 = vsel %vm764_vm12, -3.0, %v2725_v43   ;;  %v773_v8 = vsel %vm765_vm13, -3.0, %v2721_v8   ;;  %v3927_v55 = vmov %v757_v10  ;;  %v3928_v56 = vmov %v756_v13 }
 0x2e1   : > { %v3932_v52 = vmov %v752_v45  ;;  %v3933_v53 = vmov %v751_v48 }
 0x2e2 LB: > { %v796_v55 = vsel %vm47_vm0, %v2785_v15, -inf  ;;  %v802_v56 = vsel %vm47_vm0, %v2777_v45, -inf  ;;  %v799_v1 = vsel %vm47_vm0, %v2781_v48, -inf  ;;  %v805_v50 = vsel %vm47_vm0, %v2773_v58, -inf  ;;  %s779_s16 = sadd.s32 1, %s2789_s16   ;;  %s2789_s16 = sphi %s3511_s16, %s779_s16   ;;  %v2785_v15 = vphi %v750_v15, %v828_v15   ;;  %v2781_v48 = vphi %v751_v48, %v829_v48   ;;  %v2777_v45 = vphi %v752_v45, %v830_v45   ;;  %v2773_v58 = vphi %v753_v58, %v831_v58   ;;  %v2769_v17 = vphi %v754_v17, %v832_v17   ;;  %v2765_v46 = vphi %v755_v46, %v833_v46   ;;  %v2761_v13 = vphi %v756_v13, %v834_v13   ;;  %v2757_v10 = vphi %v757_v10, %v835_v10  }
 0x2e3   : > { %797 = vmax.xlane.f32.xlu0 %v796_v55  ;;  %803 = vmax.xlane.f32.xlu1 %v802_v56  ;;  %v808_v51 = vsel %vm47_vm0, %v2769_v17, -inf  ;;  %v811_v8 = vsel %vm47_vm0, %v2765_v46, -inf  ;;  %v814_v43 = vsel %vm47_vm0, %v2761_v13, -inf  ;;  %v817_v2 = vsel %vm47_vm0, %v2757_v10, -inf  ;;  %p776_p3 = scmp.ge.s32.totalorder %s779_s16, 30  }
 0x2e4   :  { %v856_v52 = vmul.f32 (%p776_p3), 1.442695, %v3093_v24  ;;  %v852_v53 = vmul.f32 (%p776_p3), 1.442695, %v3085_v20  ;;  %v858_v55 = vmul.f32 (%p776_p3), 1.442695, %v3089_v22  ;;  %vm837_vm8 = vcmp.ge.f32.partialorder (%p776_p3), %v3081_v18, %v3323_v62 }
 0x2e5   :  { %v854_v56 = vmul.f32 (%p776_p3), 1.442695, %v3081_v18  ;;  %vm836_vm9 = vcmp.ge.f32.partialorder (%p776_p3), %v3085_v20, %v3317_v60  ;;  %vm839_vm10 = vcmp.ge.f32.partialorder (%p776_p3), %v3089_v22, %v3325_v63  ;;  %vm838_vm11 = vcmp.ge.f32.partialorder (%p776_p3), %v3093_v24, %v3319_v61  ;;  %v3942_v63 = vld [vmem:[#allocation18_spill] sm:$0xff] (%p776_p3)  ;;  %s2791_s17 = smov (%p776_p3), [#allocation2]  }
 0x2e6   :  { %2257 = vpow2.f32 (%p776_p3), %v856_v52  ;;  %vm841_vm12 = vcmp.ge.f32.partialorder (%p776_p3), %v3097_v26, %v3331_v47  ;;  %vm840_vm13 = vcmp.ge.f32.partialorder (%p776_p3), %v3101_v28, %v3329_v16  ;;  %v1277_v18 = vmul.f32 (%p776_p3), %v2865_v7, %v2865_v7  ;;  %s1380_s18 = sshll.u32 (%p776_p3), %s2791_s17, 4  ;;  %s1381_s18 = int_to_ptr.vmem [resolvable:$true] %s1380_s18 }
 0x2e7   : > { %800 = vmax.xlane.f32.xlu0 %v799_v1  ;;  %806 = vmax.xlane.f32.xlu1 %v805_v50  ;;  %v862_v1 = vmul.f32 (%p776_p3), 1.442695, %v3097_v26  ;;  %2259 = vpow2.f32 (%p776_p3), %v852_v53  ;;  %v860_v50 = vmul.f32 (%p776_p3), 1.442695, %v3101_v28  ;;  %v1210_v60 = vmul.f32 (%p776_p3), %v2910_v12, %v2910_v12  ;;  %v3950_v28 = vld [vmem:[#allocation21_spill] sm:$0xff] (%p776_p3)  ;;  %s2353_s19 = scalar_lea.vmem (%p776_p3), %s1381_s18, 128  ;;  %p2358_p5 = scmp.lt.s32.totalorder (%p776_p3), %s1381_s18, %s1381_s18 }
 0x2e8   :  { %2261 = vpow2.f32 (%p776_p3), %v858_v55  ;;  %v914_v16 = vmul.f32 (%p776_p3), 1.442695, %v3950_v28  ;;  %p2354_p4 = scmp.ne.s32.totalorder (%p776_p3), %s1381_s18, %s2353_s19  ;;  %p2359_p6 = scmp.lt.s32.totalorder (%p776_p3), %s2353_s19, %s2353_s19 }
 0x2e9   :  { %2263 = vpow2.f32 (%p776_p3), %v854_v56 }
 0x2ea   :  { %2265 = vpow2.f32 (%p776_p3), %v862_v1  ;;  %p2360_p7 = por (%p776_p3), %p2359_p6, %p2358_p5 }
 0x2eb   : > { %809 = vmax.xlane.f32.xlu0 %v808_v51  ;;  %812 = vmax.xlane.f32.xlu1 %v811_v8  ;;  %2267 = vpow2.f32 (%p776_p3), %v860_v50  ;;  %v870_v50 = vmul.f32 (%p776_p3), 1.442695, %v3083_v19 }
 0x2ec   :  { %p2361_p8 = pnand (%p776_p3), %p2360_p7, %p2354_p4 }
 0x2ef   : > { %815 = vmax.xlane.f32.xlu0 %v814_v43  ;;  %818 = vmax.xlane.f32.xlu1 %v817_v2 }
 0x36c   : > { %v3532_v49 = vpop.xlane.xlu0 %797  ;;  %v3534_v3 = vpop.xlane.xlu1 %803 }
 0x36d   : > { %vm820_vm14 = vcmp.ge.f32.partialorder %v2785_v15, %v3532_v49  ;;  %vm822_vm15 = vcmp.ge.f32.partialorder %v2777_v45, %v3534_v3 }
 0x36e   : > { %v828_v15 = vsel %vm820_vm14, -3.0, %v2785_v15   ;;  %v830_v45 = vsel %vm822_vm15, -3.0, %v2777_v45   ;;  %vm843_vm14 = vcmp.ge.f32.partialorder (%p776_p3), %v3105_v30, %v3337_v5  ;;  %vm842_vm15 = vcmp.ge.f32.partialorder (%p776_p3), %v3109_v32, %v3335_v57 }
 0x36f   :  { %v866_v15 = vmul.f32 (%p776_p3), 1.442695, %v3105_v30  ;;  %v2258_v45 = vpop.eup (%p776_p3), %2257 }
 0x370   : > { %v3538_v0 = vpop.xlane.xlu0 %800  ;;  %v3540_v4 = vpop.xlane.xlu1 %806 }
 0x371   : > { %vm821_vm2 = vcmp.ge.f32.partialorder %v2781_v48, %v3538_v0  ;;  %vm823_vm3 = vcmp.ge.f32.partialorder %v2773_v58, %v3540_v4  ;;  %2269 = vpow2.f32 (%p776_p3), %v866_v15 }
 0x372   : > { %v829_v48 = vsel %vm821_vm2, -3.0, %v2781_v48   ;;  %v831_v58 = vsel %vm823_vm3, -3.0, %v2773_v58   ;;  %vm844_vm2 = vcmp.ge.f32.partialorder (%p776_p3), %v3087_v21, %v3532_v49  ;;  %vm845_vm3 = vcmp.ge.f32.partialorder (%p776_p3), %v3083_v19, %v3538_v0 }
 0x373   :  { %v2260_v48 = vpop.eup (%p776_p3), %2259  ;;  %v923_v58 = vsel (%p776_p3), %vm588_vm1, %v2258_v45, 0.0  ;;  %v904_v0 = vmul.f32 (%p776_p3), 1.442695, %v3127_v41 }
 0x374   : > { %v3544_v9 = vpop.xlane.xlu0 %809  ;;  %v3546_v59 = vpop.xlane.xlu1 %812  ;;  %924 = vadd.xlane.f32.xlu1 (%p776_p3), %v923_v58  ;;  %v868_v58 = vmul.f32 (%p776_p3), 1.442695, %v3087_v21  ;;  %v1209_v21 = vmul.f32 (%p776_p3), %v2928_v14, %v2928_v14 }
 0x375   : > { %vm824_vm4 = vcmp.ge.f32.partialorder %v2769_v17, %v3544_v9  ;;  %vm825_vm5 = vcmp.ge.f32.partialorder %v2765_v46, %v3546_v59 }
 0x376   : > { %v832_v17 = vsel %vm824_vm4, -3.0, %v2769_v17   ;;  %v833_v46 = vsel %vm825_vm5, -3.0, %v2765_v46   ;;  %778 = sbr.rel (!%p776_p3) target bundleno = 738 (0x2e2), region = 91  ;;  %vm846_vm4 = vcmp.ge.f32.partialorder (%p776_p3), %v3095_v25, %v3534_v3  ;;  %vm847_vm5 = vcmp.ge.f32.partialorder (%p776_p3), %v3091_v23, %v3540_v4  ;;  %v3936_v4 = vld [vmem:[#allocation13_spill] sm:$0xff] (%p776_p3) }
 0x377   :  { %v864_v17 = vmul.f32 (%p776_p3), 1.442695, %v3109_v32  ;;  %v2262_v46 = vpop.eup (%p776_p3), %2261 }
 0x378   : > { %v3550_v54 = vpop.xlane.xlu0 %815  ;;  %v3552_v11 = vpop.xlane.xlu1 %818  ;;  %v926_v51 = vsel (%p776_p3), %vm588_vm1, %v2262_v46, 0.0 }
 0x379   : > { %vm826_vm6 = vcmp.ge.f32.partialorder %v2761_v13, %v3550_v54  ;;  %vm827_vm7 = vcmp.ge.f32.partialorder %v2757_v10, %v3552_v11  ;;  %2271 = vpow2.f32 (%p776_p3), %v864_v17  ;;  %927 = vadd.xlane.f32.xlu1 (%p776_p3), %v926_v51 }
 0x37a   : > { %v834_v13 = vsel %vm826_vm6, -3.0, %v2761_v13   ;;  %v835_v10 = vsel %vm827_vm7, -3.0, %v2757_v10   ;;  %2273 = vpow2.f32 (%p776_p3), %v870_v50  ;;  %vm848_vm6 = vcmp.ge.f32.partialorder (%p776_p3), %v3103_v29, %v3544_v9 }
 0x37b   :  { %v917_v13 = vsel %vm588_vm1, %v2260_v48, 0.0  ;;  %v2264_v10 = vpop.eup %2263  ;;  %2275 = vpow2.f32 %v868_v58  ;;  %vm849_vm7 = vcmp.ge.f32.partialorder %v3099_v27, %v3546_v59 }
 0x37c   :  { %918 = vadd.xlane.f32.xlu0 %v917_v13  ;;  %v2266_v8 = vpop.eup %2265  ;;  %v920_v43 = vsel %vm588_vm1, %v2264_v10, 0.0  ;;  %v955_v17 = vsel %vm837_vm8, %v2264_v10, 1.0  ;;  %v954_v13 = vsel %vm836_vm9, %v2260_v48, 1.0  ;;  %v957_v10 = vsel %vm839_vm10, %v2262_v46, 1.0 }
 0x37d   :  { %v2268_v2 = vpop.eup %2267  ;;  %v932_v52 = vsel %vm588_vm1, %v2266_v8, 0.0  ;;  %v965_v51 = vsel %vm588_vm1, %v955_v17, 0.0  ;;  %v872_v48 = vmul.f32 1.442695, %v3095_v25  ;;  %v959_v50 = vsel %vm841_vm12, %v2266_v8, 1.0 }
 0x37e   :  { %v2270_v53 = vpop.eup %2269  ;;  %v929_v55 = vsel %vm588_vm1, %v2268_v2, 0.0  ;;  %933 = vadd.xlane.f32.xlu1 %v932_v52  ;;  %v956_v52 = vsel %vm838_vm11, %v2258_v45, 1.0  ;;  %v958_v45 = vsel %vm840_vm13, %v2268_v2, 1.0  ;;  %v884_v17 = vmul.f32 1.442695, %v3117_v36 }
 0x37f   :  { %v938_v1 = vsel %vm588_vm1, %v2270_v53, 0.0  ;;  %v968_v46 = vsel %vm588_vm1, %v956_v52, 0.0  ;;  %2277 = vpow2.f32 %v872_v48  ;;  %v974_v8 = vsel %vm588_vm1, %v958_v45, 0.0 }
 0x380   :  { %921 = vadd.xlane.f32.xlu0 %v920_v43  ;;  %v962_v43 = vsel %vm588_vm1, %v954_v13, 0.0  ;;  %v961_v58 = vsel %vm843_vm14, %v2270_v53, 1.0 }
 0x381   :  { %v983_v13 = vsel %vm588_vm1, %v961_v58, 0.0 }
 0x382   :  { %939 = vadd.xlane.f32.xlu1 %v938_v1  ;;  %v874_v1 = vmul.f32 1.442695, %v3091_v23 }
 0x384   :  { %930 = vadd.xlane.f32.xlu0 %v929_v55  ;;  %v971_v55 = vsel %vm588_vm1, %v957_v10, 0.0  ;;  %2279 = vpow2.f32 %v874_v1  ;;  %v886_v10 = vmul.f32 1.442695, %v3113_v34 }
 0x385   :  { %2281 = vpow2.f32 %v884_v17 }
 0x386   :  { %v2272_v56 = vpop.eup %2271  ;;  %966 = vadd.xlane.f32.xlu1 %v965_v51  ;;  %v876_v51 = vmul.f32 1.442695, %v3103_v29 }
 0x387   :  { %v935_v15 = vsel %vm588_vm1, %v2272_v56, 0.0  ;;  %v960_v2 = vsel %vm842_vm15, %v2272_v56, 1.0  ;;  %v888_v56 = vmul.f32 1.442695, %v3125_v40 }
 0x388   :  { %936 = vadd.xlane.f32.xlu0 %v935_v15  ;;  %v977_v15 = vsel %vm588_vm1, %v959_v50, 0.0  ;;  %v980_v36 = vsel %vm588_vm1, %v960_v2, 0.0  ;;  %2283 = vpow2.f32 %v876_v51 }
 0x389   :  { %2285 = vpow2.f32 %v886_v10 }
 0x38a   :  { %972 = vadd.xlane.f32.xlu1 %v971_v55  ;;  %2287 = vpow2.f32 %v888_v56 }
 0x38c   :  { %963 = vadd.xlane.f32.xlu0 %v962_v43  ;;  %v2274_v43 = vpop.eup %2273 }
 0x38d   :  { %v2276_v48 = vpop.eup %2275  ;;  %v1002_v53 = vsel %vm588_vm1, %v2274_v43, 0.0  ;;  %v1037_v40 = vsel %vm845_vm3, %v2274_v43, 1.0 }
 0x38e   :  { %978 = vadd.xlane.f32.xlu1 %v977_v15  ;;  %v999_v52 = vsel %vm588_vm1, %v2276_v48, 0.0  ;;  %v1036_v55 = vsel %vm844_vm2, %v2276_v48, 1.0  ;;  %v2278_v1 = vpop.eup %2277  ;;  %v1047_v17 = vsel %vm588_vm1, %v1037_v40, 0.0  ;;  %v900_v48 = vmul.f32 1.442695, %v3119_v37 }
 0x38f   :  { %v1044_v34 = vsel %vm588_vm1, %v1036_v55, 0.0  ;;  %v1005_v50 = vsel %vm588_vm1, %v2278_v1, 0.0  ;;  %v1038_v58 = vsel %vm846_vm4, %v2278_v1, 1.0  ;;  %v1208_v37 = vmul.f32 %v2860_v6, %v2860_v6 }
 0x390   :  { %969 = vadd.xlane.f32.xlu0 %v968_v46  ;;  %v1050_v43 = vsel %vm588_vm1, %v1038_v58, 0.0  ;;  %v892_v6 = vmul.f32 1.442695, %v3133_v44 }
 0x391   :  { %v2280_v46 = vpop.eup %2279  ;;  %v1216_v40 = vmul.f32 2.0, %v1208_v37  ;;  %v1218_v37 = vmul.f32 2.0, %v1210_v60 }
 0x392   :  { %984 = vadd.xlane.f32.xlu1 %v983_v13  ;;  %v1008_v45 = vsel %vm588_vm1, %v2280_v46, 0.0  ;;  %v2282_v15 = vpop.eup %2281  ;;  %v890_v13 = vmul.f32 1.442695, %v3121_v38 }
 0x393   :  { %v1081_v2 = vsel %vm588_vm1, %v2282_v15, 0.0 }
 0x394   :  { %975 = vadd.xlane.f32.xlu0 %v974_v8  ;;  %v878_v8 = vmul.f32 1.442695, %v3099_v27 }
 0x395   :  { %v2284_v51 = vpop.eup %2283 }
 0x396   :  { %1003 = vadd.xlane.f32.xlu1 %v1002_v53  ;;  %2289 = vpow2.f32 %v878_v8  ;;  %v2286_v10 = vpop.eup %2285  ;;  %v1011_v53 = vsel %vm588_vm1, %v2284_v51, 0.0  ;;  %v1040_v19 = vsel %vm848_vm6, %v2284_v51, 1.0  ;;  %v882_v51 = vmul.f32 1.442695, %v3107_v31 }
 0x397   :  { %2291 = vpow2.f32 %v890_v13  ;;  %v2288_v56 = vpop.eup %2287  ;;  %v1084_v38 = vsel %vm588_vm1, %v2286_v10, 0.0  ;;  %v1119_v1 = vsel %vm845_vm3, %v2286_v10, 1.0  ;;  %v894_v10 = vmul.f32 1.442695, %v3129_v42 }
 0x398   :  { %981 = vadd.xlane.f32.xlu0 %v980_v36  ;;  %v902_v36 = vmul.f32 1.442695, %v3115_v35  ;;  %v1087_v35 = vsel %vm588_vm1, %v2288_v56, 0.0  ;;  %v1120_v58 = vsel %vm846_vm4, %v2288_v56, 1.0 }
 0x399   :  { %v1132_v41 = vsel %vm588_vm1, %v1120_v58, 0.0 }
 0x39a   :  { %1045 = vadd.xlane.f32.xlu1 %v1044_v34  ;;  %2293 = vpow2.f32 %v902_v36  ;;  %v880_v34 = vmul.f32 1.442695, %v3111_v33 }
 0x39b   :  { %2295 = vpow2.f32 %v900_v48 }
 0x39c   :  { %1000 = vadd.xlane.f32.xlu0 %v999_v52  ;;  %v1039_v52 = vsel %vm847_vm5, %v2280_v46, 1.0  ;;  %v1118_v46 = vsel %vm844_vm2, %v2282_v15, 1.0  ;;  %2297 = vpow2.f32 %v880_v34  ;;  %v1056_v15 = vsel %vm588_vm1, %v1040_v19, 0.0 }
 0x39d   :  { %v1053_v55 = vsel %vm588_vm1, %v1039_v52, 0.0  ;;  %2299 = vpow2.f32 %v892_v6  ;;  %v1228_v6 = vmul.f32 1.442695, %v1218_v37  ;;  %v1211_v19 = vmul.f32 %v3936_v4, %v3936_v4 }
 0x39e   :  { %1009 = vadd.xlane.f32.xlu1 %v1008_v45  ;;  %v1126_v45 = vsel %vm588_vm1, %v1118_v46, 0.0  ;;  %2301 = vpow2.f32 %v904_v0 }
 0x39f   :  { %v1219_v61 = vmul.f32 2.0, %v1211_v19 }
 0x3a0   :  { %1006 = vadd.xlane.f32.xlu0 %v1005_v50  ;;  %v1129_v50 = vsel %vm588_vm1, %v1119_v1, 0.0 }
 0x3a2   :  { %1082 = vadd.xlane.f32.xlu1 %v1081_v2  ;;  %v1217_v2 = vmul.f32 2.0, %v1209_v21 }
 0x3a3   :  { %v2290_v49 = vpop.eup %2289 }
 0x3a4   :  { %1048 = vadd.xlane.f32.xlu0 %v1047_v17  ;;  %v1224_v17 = vmul.f32 1.442695, %v1216_v40  ;;  %v2292_v44 = vpop.eup %2291  ;;  %v1014_v8 = vsel %vm588_vm1, %v2290_v49, 0.0  ;;  %v1226_v25 = vmul.f32 1.442695, %v1217_v2  ;;  %v1041_v20 = vsel %vm849_vm7, %v2290_v49, 1.0 }
 0x3a5   :  { %v1059_v56 = vsel %vm588_vm1, %v1041_v20, 0.0  ;;  %v3938_v2 = vld [vmem:[#allocation22_spill] sm:$0xff] }
 0x3a6   :  { %1012 = vadd.xlane.f32.xlu1 %v1011_v53  ;;  %2303 = vpow2.f32 %v1224_v17  ;;  %v906_v53 = vmul.f32 1.442695, %v3123_v39  ;;  %v1285_v39 = vmul.f32 2.0, %v1277_v18  ;;  %v3937_v17 = vld [vmem:[#allocation15_spill] sm:$0xff]  ;;  %v3940_v18 = vld [vmem:[#allocation20_spill] sm:$0xff] }
 0x3a7   :  { %v2294_v13 = vpop.eup %2293  ;;  %2305 = vpow2.f32 %v882_v51  ;;  %v3939_v51 = vld [vmem:[#allocation19_spill] sm:$0xff] }
 0x3a8   :  { %1051 = vadd.xlane.f32.xlu0 %v1050_v43  ;;  %v2296_v14 = vpop.eup %2295  ;;  %v1090_v43 = vsel %vm588_vm1, %v2292_v44, 0.0  ;;  %v1164_v36 = vsel %vm837_vm8, %v2294_v13, 1.0  ;;  %2307 = vpow2.f32 %v1226_v25  ;;  %v1293_v34 = vmul.f32 1.442695, %v1285_v39 }
 0x3a9   :  { %v1163_v3 = vsel %vm836_vm9, %v2296_v14, 1.0  ;;  %v1174_v48 = vsel %vm588_vm1, %v1164_v36, 0.0  ;;  %v2298_v42 = vpop.eup %2297  ;;  %2309 = vpow2.f32 %v894_v10  ;;  %vm850_vm8 = vcmp.ge.f32.partialorder %v3111_v33, %v3550_v54 }
 0x3aa   :  { %1088 = vadd.xlane.f32.xlu1 %v1087_v35  ;;  %v1171_v62 = vsel %vm588_vm1, %v1163_v3, 0.0  ;;  %v1017_v52 = vsel %vm588_vm1, %v2298_v42, 0.0  ;;  %v1121_v35 = vsel %vm847_vm5, %v2292_v44, 1.0  ;;  %2311 = vpow2.f32 %v906_v53 }
 0x3ab   :  { %v1135_v1 = vsel %vm588_vm1, %v1121_v35, 0.0  ;;  %2313 = vpow2.f32 %v1293_v34  ;;  %v1279_v44 = vmul.f32 %v3937_v17, %v3937_v17  ;;  %v896_v13 = vmul.f32 1.442695, %v3938_v2  ;;  %v3944_v34 = vld [vmem:[#allocation23_spill] sm:$0xff] }
 0x3ac   :  { %1085 = vadd.xlane.f32.xlu0 %v1084_v38  ;;  %v3935_v38 = vld [vmem:[#allocation16_spill] sm:$0xff]  ;;  %2315 = vpow2.f32 %v1228_v6  ;;  %v1230_v25 = vmul.f32 1.442695, %v1219_v61  ;;  %vm851_vm9 = vcmp.ge.f32.partialorder %v3107_v31, %v3552_v11 }
 0x3ad   :  { %v1278_v7 = vmul.f32 %v3935_v38, %v3935_v38  ;;  %v1287_v3 = vmul.f32 2.0, %v1279_v44  ;;  %v910_v38 = vmul.f32 1.442695, %v3942_v63 }
 0x3ae   :  { %1130 = vadd.xlane.f32.xlu1 %v1129_v50 }
 0x3af   :  { %v1286_v40 = vmul.f32 2.0, %v1278_v7  ;;  %v1297_v60 = vmul.f32 1.442695, %v1287_v3  ;;  %v3943_v7 = vld [vmem:[#allocation11_spill] sm:$0xff] }
 0x3b0   :  { %1054 = vadd.xlane.f32.xlu0 %v1053_v55  ;;  %v2300_v55 = vpop.eup %2299  ;;  %v1212_v29 = vmul.f32 %v3943_v7, %v3943_v7 }
 0x3b1   :  { %v2302_v12 = vpop.eup %2301  ;;  %v1093_v50 = vsel %vm588_vm1, %v2300_v55, 0.0  ;;  %v1295_v0 = vmul.f32 1.442695, %v1286_v40  ;;  %v1122_v53 = vsel %vm848_vm6, %v2300_v55, 1.0  ;;  %v3945_v40 = vld [vmem:[#allocation12_spill] sm:$0xff] }
 0x3b2   :  { %1057 = vadd.xlane.f32.xlu1 %v1056_v15  ;;  %v1138_v22 = vsel %vm588_vm1, %v1122_v53, 0.0 }
 0x3b3   :  { %v2304_v46 = vpop.eup %2303  ;;  %2317 = vpow2.f32 %v1295_v0 }
 0x3b4   :  { %1127 = vadd.xlane.f32.xlu0 %v1126_v45  ;;  %v1165_v45 = vsel %vm838_vm11, %v2302_v12, 1.0  ;;  %v1240_v23 = vsel %vm47_vm0, %v2304_v46, 0.0  ;;  %v2306_v21 = vpop.eup %2305  ;;  %2319 = vpow2.f32 %v896_v13  ;;  %v1220_v12 = vmul.f32 2.0, %v1212_v29 }
 0x3b5   :  { %v1177_v49 = vsel %vm588_vm1, %v1165_v45, 0.0  ;;  %v2308_v15 = vpop.eup %2307  ;;  %v1020_v24 = vsel %vm588_vm1, %v2306_v21, 0.0  ;;  %v1043_v55 = vsel %vm851_vm9, %v2306_v21, 1.0  ;;  %v912_v46 = vmul.f32 1.442695, %v3944_v34  ;;  %v3946_v21 = vld [vmem:[#allocation9_spill] sm:$0xff] }
 0x3b6   :  { %1133 = vadd.xlane.f32.xlu1 %v1132_v41  ;;  %v1243_v58 = vsel %vm47_vm0, %v2308_v15, 0.0  ;;  %v1042_v41 = vsel %vm850_vm8, %v2298_v42, 1.0  ;;  %v3941_v42 = vld [vmem:[#allocation14_spill] sm:$0xff]  ;;  %v1281_v45 = vmul.f32 %v3945_v40, %v3945_v40  ;;  %v1232_v19 = vmul.f32 1.442695, %v1220_v12 }
 0x3b7   :  { %v1062_v10 = vsel %vm588_vm1, %v1042_v41, 0.0 }
 0x3b8   :  { %1015 = vadd.xlane.f32.xlu0 %v1014_v8  ;;  %v2310_v8 = vpop.eup %2309  ;;  %v1289_v44 = vmul.f32 2.0, %v1281_v45 }
 0x3b9   :  { %v2312_v14 = vpop.eup %2311  ;;  %v1096_v36 = vsel %vm588_vm1, %v2310_v8, 0.0  ;;  %v1123_v4 = vsel %vm849_vm7, %v2310_v8, 1.0 }
 0x3ba   :  { %1175 = vadd.xlane.f32.xlu1 %v1174_v48  ;;  %v1166_v48 = vsel %vm839_vm10, %v2312_v14, 1.0  ;;  %v2314_v39 = vpop.eup %2313  ;;  %v1141_v17 = vsel %vm588_vm1, %v1123_v4, 0.0  ;;  %v1301_v41 = vmul.f32 1.442695, %v1289_v44 }
 0x3bb   :  { %v1180_v20 = vsel %vm588_vm1, %v1166_v48, 0.0  ;;  %v2316_v9 = vpop.eup %2315 }
 0x3bc   :  { %1091 = vadd.xlane.f32.xlu0 %v1090_v43  ;;  %v908_v43 = vmul.f32 1.442695, %v3939_v51  ;;  %v1246_v37 = vsel %vm47_vm0, %v2316_v9, 0.0  ;;  %v3948_v51 = vld [vmem:[#allocation5_spill] sm:$0xff] }
 0x3be   :  { %1060 = vadd.xlane.f32.xlu1 %v1059_v56  ;;  %2321 = vpow2.f32 %v908_v43  ;;  %v1280_v56 = vmul.f32 %v3941_v42, %v3941_v42  ;;  %v1215_v43 = vmul.f32 %v3948_v51, %v3948_v51 }
 0x3bf   :  { %2323 = vpow2.f32 %v1230_v25 }
 0x3c0   :  { %1172 = vadd.xlane.f32.xlu0 %v1171_v62  ;;  %v898_v62 = vmul.f32 1.442695, %v3940_v18  ;;  %v1288_v35 = vmul.f32 2.0, %v1280_v56  ;;  %v1223_v42 = vmul.f32 2.0, %v1215_v43  ;;  %v3952_v56 = vld [vmem:[#allocation6_spill] sm:$0xff] }
 0x3c2   :  { %1136 = vadd.xlane.f32.xlu1 %v1135_v1  ;;  %2325 = vpow2.f32 %v898_v62  ;;  %v2318_v1 = vpop.eup %2317  ;;  %v1299_v6 = vmul.f32 1.442695, %v1288_v35  ;;  %v3951_v62 = vld [vmem:[#allocation8_spill] sm:$0xff] }
 0x3c3   :  { %2327 = vpow2.f32 %v1297_v60  ;;  %v2320_v0 = vpop.eup %2319 }
 0x3c4   :  { %1018 = vadd.xlane.f32.xlu0 %v1017_v52  ;;  %v1309_v52 = vsel %vm47_vm0, %v2314_v39, 0.0  ;;  %2329 = vpow2.f32 %v910_v38  ;;  %v1099_v27 = vsel %vm588_vm1, %v2320_v0, 0.0  ;;  %v1284_v39 = vmul.f32 %v3952_v56, %v3952_v56 }
 0x3c5   :  { %2331 = vpow2.f32 %v912_v46  ;;  %v1124_v7 = vsel %vm850_vm8, %v2320_v0, 1.0 }
 0x3c6   :  { %1241 = vadd.xlane.f32.xlu1 %v1240_v23  ;;  %v1312_v23 = vsel %vm47_vm0, %v2318_v1, 0.0  ;;  %2333 = vpow2.f32 %v1299_v6  ;;  %v1292_v35 = vmul.f32 2.0, %v1284_v39 }
 0x3c7   :  { %2335 = vpow2.f32 %v1232_v19 }
 0x3c8   :  { %1094 = vadd.xlane.f32.xlu0 %v1093_v50  ;;  %v1065_v50 = vsel %vm588_vm1, %v1043_v55, 0.0  ;;  %2337 = vpow2.f32 %v1301_v41  ;;  %v1144_v55 = vsel %vm588_vm1, %v1124_v7, 0.0  ;;  %v1307_v54 = vmul.f32 1.442695, %v1292_v35 }
 0x3ca   :  { %1021 = vadd.xlane.f32.xlu1 %v1020_v24  ;;  %v3947_v24 = vld [vmem:[#allocation7_spill] sm:$0xff] }
 0x3cb   :  { %v2322_v15 = vpop.eup %2321  ;;  %v1214_v61 = vmul.f32 %v3947_v24, %v3947_v24 }
 0x3cc   :  { %1178 = vadd.xlane.f32.xlu0 %v1177_v49  ;;  %v1213_v49 = vmul.f32 %v3946_v21, %v3946_v21  ;;  %v1167_v8 = vsel %vm840_vm13, %v2322_v15, 1.0 }
 0x3cd   :  { %v1222_v2 = vmul.f32 2.0, %v1214_v61  ;;  %v1183_v25 = vsel %vm588_vm1, %v1167_v8, 0.0 }
 0x3ce   :  { %1097 = vadd.xlane.f32.xlu1 %v1096_v36  ;;  %v1221_v59 = vmul.f32 2.0, %v1213_v49 }
 0x3cf   :  { %v1236_v18 = vmul.f32 1.442695, %v1222_v2 }
 0x3d0   :  { %1244 = vadd.xlane.f32.xlu0 %v1243_v58  ;;  %v2324_v58 = vpop.eup %2323  ;;  %v1234_v3 = vmul.f32 1.442695, %v1221_v59 }
 0x3d1   :  { %v2326_v13 = vpop.eup %2325  ;;  %v1249_v14 = vsel %vm47_vm0, %v2324_v58, 0.0 }
 0x3d2   :  { %1181 = vadd.xlane.f32.xlu1 %v1180_v20  ;;  %v2328_v36 = vpop.eup %2327  ;;  %v1283_v20 = vmul.f32 %v3951_v62, %v3951_v62  ;;  %v1102_v60 = vsel %vm588_vm1, %v2326_v13, 0.0  ;;  %2339 = vpow2.f32 %v1234_v3 }
 0x3d3   :  { %v2330_v53 = vpop.eup %2329  ;;  %2341 = vpow2.f32 %v914_v16 }
 0x3d4   :  { %1063 = vadd.xlane.f32.xlu0 %v1062_v10  ;;  %v3949_v10 = vld [vmem:[#allocation10_spill] sm:$0xff]  ;;  %v1168_v63 = vsel %vm841_vm12, %v2330_v53, 1.0  ;;  %v2332_v29 = vpop.eup %2331  ;;  %2343 = vpow2.f32 %v1236_v18  ;;  %v1291_v47 = vmul.f32 2.0, %v1283_v20 }
 0x3d5   :  { %v1282_v48 = vmul.f32 %v3949_v10, %v3949_v10  ;;  %v1186_v9 = vsel %vm588_vm1, %v1168_v63, 0.0  ;;  %v1169_v34 = vsel %vm842_vm15, %v2332_v29, 1.0 }
 0x3d6   :  { %1310 = vadd.xlane.f32.xlu1 %v1309_v52  ;;  %v1238_v52 = vmul.f32 1.442695, %v1223_v42  ;;  %v1305_v46 = vmul.f32 1.442695, %v1291_v47  ;;  %v1189_v6 = vsel %vm588_vm1, %v1169_v34, 0.0 }
 0x3d7   :  { %v1290_v38 = vmul.f32 2.0, %v1282_v48 }
 0x3d8   :  { %1139 = vadd.xlane.f32.xlu0 %v1138_v22  ;;  %v1315_v22 = vsel %vm47_vm0, %v2328_v36, 0.0  ;;  %2345 = vpow2.f32 %v1238_v52 }
 0x3d9   :  { %v1303_v26 = vmul.f32 1.442695, %v1290_v38 }
 0x3da   :  { %1066 = vadd.xlane.f32.xlu1 %v1065_v50  ;;  %v1125_v50 = vsel %vm851_vm9, %v2326_v13, 1.0 }
 0x3db   :  { %2347 = vpow2.f32 %v1303_v26  ;;  %v1147_v45 = vsel %vm588_vm1, %v1125_v50, 0.0 }
 0x3dc   :  { %1247 = vadd.xlane.f32.xlu0 %v1246_v37  ;;  %v2334_v37 = vpop.eup %2333  ;;  %2349 = vpow2.f32 %v1307_v54 }
 0x3dd   :  { %v2336_v12 = vpop.eup %2335  ;;  %v1318_v33 = vsel %vm47_vm0, %v2334_v37, 0.0  ;;  %2351 = vpow2.f32 %v1305_v46 }
 0x3de   :  { %1142 = vadd.xlane.f32.xlu1 %v1141_v17  ;;  %v1252_v1 = vsel %vm47_vm0, %v2336_v12, 0.0  ;;  %v2338_v40 = vpop.eup %2337 }
 0x3df   :  { %v1321_v32 = vsel %vm47_vm0, %v2338_v40, 0.0 }
 0x3e0   :  { %1313 = vadd.xlane.f32.xlu0 %v1312_v23  ;;  %v2340_v23 = vpop.eup %2339 }
 0x3e1   :  { %v2342_v4 = vpop.eup %2341  ;;  %v1255_v19 = vsel %vm47_vm0, %v2340_v23, 0.0 }
 0x3e2   :  { %1250 = vadd.xlane.f32.xlu1 %v1249_v14  ;;  %v2344_v57 = vpop.eup %2343  ;;  %v1170_v31 = vsel %vm843_vm14, %v2342_v4, 1.0 }
 0x3e3   :  { %v1258_v11 = vsel %vm47_vm0, %v2344_v57, 0.0  ;;  %v1192_v49 = vsel %vm588_vm1, %v1170_v31, 0.0  ;;  %v3953_v57 = vld [vmem:[#allocation17_spill] sm:$0xff] }
 0x3e4   :  { %1100 = vadd.xlane.f32.xlu0 %v1099_v27  ;;  %vm1349_vm1 = vcmp.eq.s32.totalorder %v3953_v57, 1  ;;  %vm1352_vm10 = vcmp.eq.s32.totalorder %v3953_v57, 2  ;;  %vm1355_vm11 = vcmp.eq.s32.totalorder %v3953_v57, 3  ;;  %vm1358_vm12 = vcmp.eq.s32.totalorder %v3953_v57, 4 }
 0x3e5   :  { %v2346_v21 = vpop.eup %2345  ;;  %vm1361_vm13 = vcmp.eq.s32.totalorder %v3953_v57, 5  ;;  %vm1364_vm14 = vcmp.eq.s32.totalorder %v3953_v57, 6  ;;  %vm1367_vm15 = vcmp.eq.s32.totalorder %v3953_v57, 7  ;;  %vm1370_vm2 = vcmp.eq.s32.totalorder %v3953_v57, 8 }
 0x3e6   :  { %1103 = vadd.xlane.f32.xlu1 %v1102_v60  ;;  %v1261_v15 = vsel %vm47_vm0, %v2346_v21, 0.0 }
 0x3e8   :  { %1184 = vadd.xlane.f32.xlu0 %v1183_v25  ;;  %v2348_v0 = vpop.eup %2347 }
 0x3e9   :  { %v2350_v24 = vpop.eup %2349  ;;  %v1324_v61 = vsel %vm47_vm0, %v2348_v0, 0.0 }
 0x3ea   :  { %1187 = vadd.xlane.f32.xlu1 %v1186_v9  ;;  %v2352_v17 = vpop.eup %2351  ;;  %v1330_v5 = vsel %vm47_vm0, %v2350_v24, 0.0 }
 0x3eb   :  { %v1327_v58 = vsel %vm47_vm0, %v2352_v17, 0.0  ;;  %vm1346_vm0 = vcmp.eq.s32.totalorder %v3953_v57, 0 }
 0x3ec   :  { %1316 = vadd.xlane.f32.xlu0 %v1315_v22 }
 0x3ee   :  { %1319 = vadd.xlane.f32.xlu1 %v1318_v33 }
 0x3f0   :  { %1145 = vadd.xlane.f32.xlu0 %v1144_v55 }
 0x3f2   :  { %1190 = vadd.xlane.f32.xlu1 %v1189_v6 }
 0x3f4   :  { %1253 = vadd.xlane.f32.xlu0 %v1252_v1 }
 0x3f6   :  { %1322 = vadd.xlane.f32.xlu1 %v1321_v32 }
 0x3f8   :  { %1148 = vadd.xlane.f32.xlu0 %v1147_v45 }
 0x3fa   :  { %1259 = vadd.xlane.f32.xlu1 %v1258_v11 }
 0x3fc   :  { %1256 = vadd.xlane.f32.xlu0 %v1255_v19 }
 0x3fd   :  { %v925_v30 = vpop.xlane.xlu1 %924 }
 0x3fe   :  { %1262 = vadd.xlane.f32.xlu1 %v1261_v15 }
 0x400   :  { %1193 = vadd.xlane.f32.xlu0 %v1192_v49 }
 0x402   :  { %1331 = vadd.xlane.f32.xlu1 %v1330_v5  ;;  %v928_v27 = vpop.xlane.xlu1 %927 }
 0x404   :  { %1325 = vadd.xlane.f32.xlu0 %v1324_v61 }
 0x405   :  { %v919_v44 = vpop.xlane.xlu0 %918 }
 0x407   :  { %v934_v13 = vpop.xlane.xlu1 %933 }
 0x408   :  { %1328 = vadd.xlane.f32.xlu0 %v1327_v58 }
 0x409   :  { %v922_v59 = vpop.xlane.xlu0 %921 }
 0x40a   :  { %v941_v8 = vadd.f32 %v922_v59, %v919_v44 }
 0x40b   :  { %v940_v43 = vpop.xlane.xlu1 %939 }
 0x40c   :  { %v942_v2 = vadd.f32 %v941_v8, %v925_v30 }
 0x40d   :  { %v931_v14 = vpop.xlane.xlu0 %930 }
 0x40e   :  { %v943_v41 = vadd.f32 %v942_v2, %v928_v27 }
 0x40f   :  { %v967_v10 = vpop.xlane.xlu1 %966 }
 0x410   :  { %v944_v51 = vadd.f32 %v943_v41, %v931_v14 }
 0x411   :  { %v937_v36 = vpop.xlane.xlu0 %936 }
 0x412   :  { %v945_v25 = vadd.f32 %v944_v51, %v934_v13 }
 0x413   :  { %v973_v16 = vpop.xlane.xlu1 %972 }
 0x414   :  { %v946_v3 = vadd.f32 %v945_v25, %v937_v36 }
 0x415   :  { %v964_v48 = vpop.xlane.xlu0 %963 }
 0x416   :  { %v947_v53 = vadd.f32 %v946_v3, %v940_v43  ;;  %v986_v28 = vadd.f32 %v967_v10, %v964_v48 }
 0x417   :  { %v979_v60 = vpop.xlane.xlu1 %978 }
 0x418   :  { %v948_v62 = vrot.slane %v947_v53, 4 }
 0x419   :  { %v970_v18 = vpop.xlane.xlu0 %969 }
 0x41a   :  { %v987_v20 = vadd.f32 %v986_v28, %v970_v18  ;;  %v949_v39 = vadd.f32 %v948_v62, %v947_v53 }
 0x41b   :  { %v985_v63 = vpop.xlane.xlu1 %984 }
 0x41c   :  { %v988_v42 = vadd.f32 %v987_v20, %v973_v16  ;;  %v950_v29 = vrot.slane %v949_v39, 2 }
 0x41d   :  { %v976_v56 = vpop.xlane.xlu0 %975 }
 0x41e   :  { %v989_v22 = vadd.f32 %v988_v42, %v976_v56  ;;  %v951_v55 = vadd.f32 %v950_v29, %v949_v39 }
 0x41f   :  { %v1004_v35 = vpop.xlane.xlu1 %1003 }
 0x420   :  { %v990_v38 = vadd.f32 %v989_v22, %v979_v60  ;;  %v952_v1 = vrot.slane %v951_v55, 1 }
 0x421   :  { %v982_v7 = vpop.xlane.xlu0 %981 }
 0x422   :  { %v991_v9 = vadd.f32 %v990_v38, %v982_v7  ;;  %v953_v23 = vadd.f32 %v952_v1, %v951_v55 }
 0x423   :  { %v1046_v33 = vpop.xlane.xlu1 %1045 }
 0x424   :  { %v992_v52 = vadd.f32 %v991_v9, %v985_v63  ;;  %v1347_v21 = vsel %vm1346_vm0, %v953_v23, 0.0 }
 0x425   :  { %v1001_v37 = vpop.xlane.xlu0 %1000 }
 0x426   :  { %v993_v26 = vrot.slane %v992_v52, 4  ;;  %v1023_v47 = vadd.f32 %v1004_v35, %v1001_v37 }
 0x427   :  { %v1010_v6 = vpop.xlane.xlu1 %1009 }
 0x428   :  { %v994_v12 = vadd.f32 %v993_v26, %v992_v52 }
 0x429   :  { %v1007_v54 = vpop.xlane.xlu0 %1006 }
 0x42a   :  { %v995_v34 = vrot.slane %v994_v12, 2  ;;  %v1024_v46 = vadd.f32 %v1023_v47, %v1007_v54 }
 0x42b   :  { %v1083_v31 = vpop.xlane.xlu1 %1082 }
 0x42c   :  { %v996_v50 = vadd.f32 %v995_v34, %v994_v12  ;;  %v1025_v40 = vadd.f32 %v1024_v46, %v1010_v6 }
 0x42d   :  { %v1049_v45 = vpop.xlane.xlu0 %1048 }
 0x42e   :  { %v997_v4 = vrot.slane %v996_v50, 1  ;;  %v1068_v32 = vadd.f32 %v1049_v45, %v1046_v33 }
 0x42f   :  { %v1013_v24 = vpop.xlane.xlu1 %1012 }
 0x430   :  { %v998_v19 = vadd.f32 %v997_v4, %v996_v50  ;;  %v1026_v61 = vadd.f32 %v1025_v40, %v1013_v24 }
 0x431   :  { %v1052_v11 = vpop.xlane.xlu0 %1051 }
 0x432   :  { %v1350_v49 = vsel %vm1349_vm1, %v998_v19, 0.0  ;;  %v1069_v0 = vadd.f32 %v1068_v32, %v1052_v11 }
 0x433   :  { %v1351_v15 = vadd.f32 %v1350_v49, %v1347_v21  ;;  %v1089_v5 = vpop.xlane.xlu1 %1088 }
 0x435   :  { %v1086_v17 = vpop.xlane.xlu0 %1085 }
 0x436   :  { %v1105_v30 = vadd.f32 %v1086_v17, %v1083_v31 }
 0x437   :  { %v1131_v59 = vpop.xlane.xlu1 %1130 }
 0x438   :  { %v1106_v44 = vadd.f32 %v1105_v30, %v1089_v5 }
 0x439   :  { %v1055_v58 = vpop.xlane.xlu0 %1054 }
 0x43a   :  { %v1070_v27 = vadd.f32 %v1069_v0, %v1055_v58 }
 0x43b   :  { %v1058_v13 = vpop.xlane.xlu1 %1057 }
 0x43c   :  { %v1071_v14 = vadd.f32 %v1070_v27, %v1058_v13 }
 0x43d   :  { %v1128_v8 = vpop.xlane.xlu0 %1127 }
 0x43e   :  { %v1150_v2 = vadd.f32 %v1131_v59, %v1128_v8 }
 0x43f   :  { %v1134_v43 = vpop.xlane.xlu1 %1133 }
 0x440   :  { %v1151_v5 = vadd.f32 %v1150_v2, %v1134_v43 }
 0x441   :  { %v1016_v41 = vpop.xlane.xlu0 %1015 }
 0x442   :  { %v1027_v51 = vadd.f32 %v1026_v61, %v1016_v41 }
 0x443   :  { %v3841_v25 = vpop.xlane.xlu1 %1175 }
 0x445   :  { %v1092_v36 = vpop.xlane.xlu0 %1091 }
 0x446   :  { %v1107_v6 = vadd.f32 %v1106_v44, %v1092_v36 }
 0x447   :  { %v1061_v10 = vpop.xlane.xlu1 %1060 }
 0x448   :  { %v1072_v37 = vadd.f32 %v1071_v14, %v1061_v10 }
 0x449   :  { %v1173_v3 = vpop.xlane.xlu0 %1172 }
 0x44a   :  { %v1195_v10 = vadd.f32 %v3841_v25, %v1173_v3 }
 0x44b   :  { %v1137_v53 = vpop.xlane.xlu1 %1136 }
 0x44c   :  { %v1152_v8 = vadd.f32 %v1151_v5, %v1137_v53 }
 0x44d   :  { %v1019_v48 = vpop.xlane.xlu0 %1018 }
 0x44e   :  { %v1028_v62 = vadd.f32 %v1027_v51, %v1019_v48 }
 0x44f   :  { %v3843_v16 = vpop.xlane.xlu1 %1241 }
 0x451   :  { %v1095_v28 = vpop.xlane.xlu0 %1094 }
 0x452   :  { %v1108_v23 = vadd.f32 %v1107_v6, %v1095_v28 }
 0x453   :  { %v1022_v20 = vpop.xlane.xlu1 %1021 }
 0x454   :  { %v1029_v60 = vadd.f32 %v1028_v62, %v1022_v20 }
 0x455   :  { %v1179_v18 = vpop.xlane.xlu0 %1178 }
 0x456   :  { %v1030_v56 = vrot.slane %v1029_v60, 4  ;;  %v1196_v62 = vadd.f32 %v1195_v10, %v1179_v18 }
 0x457   :  { %v1098_v39 = vpop.xlane.xlu1 %1097 }
 0x458   :  { %v1031_v22 = vadd.f32 %v1030_v56, %v1029_v60  ;;  %v1109_v19 = vadd.f32 %v1108_v23, %v1098_v39 }
 0x459   :  { %v1245_v42 = vpop.xlane.xlu0 %1244 }
 0x45a   :  { %v1032_v38 = vrot.slane %v1031_v22, 2  ;;  %v1264_v2 = vadd.f32 %v1245_v42, %v3843_v16 }
 0x45b   :  { %v1182_v7 = vpop.xlane.xlu1 %1181 }
 0x45c   :  { %v1033_v29 = vadd.f32 %v1032_v38, %v1031_v22  ;;  %v1197_v39 = vadd.f32 %v1196_v62, %v1182_v7 }
 0x45d   :  { %v1064_v63 = vpop.xlane.xlu0 %1063 }
 0x45e   :  { %v1034_v52 = vrot.slane %v1033_v29, 1  ;;  %v1073_v12 = vadd.f32 %v1072_v37, %v1064_v63 }
 0x45f   :  { %v3846_v35 = vpop.xlane.xlu1 %1310 }
 0x460   :  { %v1035_v55 = vadd.f32 %v1034_v52, %v1033_v29 }
 0x461   :  { %v1140_v9 = vpop.xlane.xlu0 %1139 }
 0x462   :  { %v1353_v47 = vsel %vm1352_vm10, %v1035_v55, 0.0  ;;  %v1153_v14 = vadd.f32 %v1152_v8, %v1140_v9 }
 0x463   :  { %v1354_v33 = vadd.f32 %v1353_v47, %v1351_v15  ;;  %v1067_v54 = vpop.xlane.xlu1 %1066 }
 0x464   :  { %v1074_v1 = vadd.f32 %v1073_v12, %v1067_v54 }
 0x465   :  { %v1248_v26 = vpop.xlane.xlu0 %1247 }
 0x466   :  { %v1075_v46 = vrot.slane %v1074_v1, 4  ;;  %v1265_v22 = vadd.f32 %v1264_v2, %v1248_v26 }
 0x467   :  { %v1143_v50 = vpop.xlane.xlu1 %1142 }
 0x468   :  { %v1076_v40 = vadd.f32 %v1075_v46, %v1074_v1  ;;  %v1154_v48 = vadd.f32 %v1153_v14, %v1143_v50 }
 0x469   :  { %v1314_v34 = vpop.xlane.xlu0 %1313 }
 0x46a   :  { %v1077_v4 = vrot.slane %v1076_v40, 2  ;;  %v1333_v47 = vadd.f32 %v1314_v34, %v3846_v35 }
 0x46b   :  { %v1251_v32 = vpop.xlane.xlu1 %1250 }
 0x46c   :  { %v1078_v31 = vadd.f32 %v1077_v4, %v1076_v40  ;;  %v1266_v25 = vadd.f32 %v1265_v22, %v1251_v32 }
 0x46d   :  { %v1101_v45 = vpop.xlane.xlu0 %1100 }
 0x46e   :  { %v1079_v21 = vrot.slane %v1078_v31, 1  ;;  %v1110_v49 = vadd.f32 %v1109_v19, %v1101_v45 }
 0x46f   :  { %v1104_v0 = vpop.xlane.xlu1 %1103 }
 0x470   :  { %v1080_v15 = vadd.f32 %v1079_v21, %v1078_v31  ;;  %v1111_v24 = vadd.f32 %v1110_v49, %v1104_v0 }
 0x471   :  { %v1185_v11 = vpop.xlane.xlu0 %1184 }
 0x472   :  { %v1356_v17 = vsel %vm1355_vm11, %v1080_v15, 0.0  ;;  %v1112_v30 = vrot.slane %v1111_v24, 4  ;;  %v1198_v38 = vadd.f32 %v1197_v39, %v1185_v11 }
 0x473   :  { %v1357_v44 = vadd.f32 %v1356_v17, %v1354_v33  ;;  %v1188_v58 = vpop.xlane.xlu1 %1187 }
 0x474   :  { %v1113_v27 = vadd.f32 %v1112_v30, %v1111_v24  ;;  %v1199_v37 = vadd.f32 %v1198_v38, %v1188_v58 }
 0x475   :  { %v1317_v61 = vpop.xlane.xlu0 %1316 }
 0x476   :  { %v1114_v13 = vrot.slane %v1113_v27, 2  ;;  %v1334_v7 = vadd.f32 %v1333_v47, %v1317_v61 }
 0x477   :  { %v1320_v41 = vpop.xlane.xlu1 %1319 }
 0x478   :  { %v1115_v51 = vadd.f32 %v1114_v13, %v1113_v27  ;;  %v1335_v50 = vadd.f32 %v1334_v7, %v1320_v41 }
 0x479   :  { %v1146_v59 = vpop.xlane.xlu0 %1145 }
 0x47a   :  { %v1116_v28 = vrot.slane %v1115_v51, 1  ;;  %v1155_v20 = vadd.f32 %v1154_v48, %v1146_v59 }
 0x47b   :  { %v1191_v60 = vpop.xlane.xlu1 %1190 }
 0x47c   :  { %v1117_v43 = vadd.f32 %v1116_v28, %v1115_v51  ;;  %v1200_v12 = vadd.f32 %v1199_v37, %v1191_v60 }
 0x47d   :  { %v1254_v36 = vpop.xlane.xlu0 %1253 }
 0x47e   :  { %v1359_v63 = vsel %vm1358_vm12, %v1117_v43, 0.0  ;;  %v1267_v55 = vadd.f32 %v1266_v25, %v1254_v36 }
 0x47f   :  { %v1323_v9 = vpop.xlane.xlu1 %1322  ;;  %v1360_v52 = vadd.f32 %v1359_v63, %v1357_v44 }
 0x480   :  { %v1336_v19 = vadd.f32 %v1335_v50, %v1323_v9 }
 0x481   :  { %v1149_v56 = vpop.xlane.xlu0 %1148 }
 0x482   :  { %v1156_v53 = vadd.f32 %v1155_v20, %v1149_v56 }
 0x483   :  { %v1260_v16 = vpop.xlane.xlu1 %1259 }
 0x484   :  { %v1157_v29 = vrot.slane %v1156_v53, 4 }
 0x485   :  { %v1257_v3 = vpop.xlane.xlu0 %1256 }
 0x486   :  { %v1158_v18 = vadd.f32 %v1157_v29, %v1156_v53  ;;  %v1268_v42 = vadd.f32 %v1267_v55, %v1257_v3 }
 0x487   :  { %v1263_v45 = vpop.xlane.xlu1 %1262 }
 0x488   :  { %v1159_v33 = vrot.slane %v1158_v18, 2  ;;  %v1269_v46 = vadd.f32 %v1268_v42, %v1260_v16 }
 0x489   :  { %v1194_v54 = vpop.xlane.xlu0 %1193 }
 0x48a   :  { %v1160_v1 = vadd.f32 %v1159_v33, %v1158_v18  ;;  %v1201_v26 = vadd.f32 %v1200_v12, %v1194_v54  ;;  %v1270_v23 = vadd.f32 %v1269_v46, %v1263_v45 }
 0x48b   :  { %v1332_v15 = vpop.xlane.xlu1 %1331 }
 0x48c   :  { %v1161_v6 = vrot.slane %v1160_v1, 1  ;;  %v1202_v40 = vrot.slane %v1201_v26, 4  ;;  %v1271_v34 = vrot.slane %v1270_v23, 4 }
 0x48d   :  { %v1326_v4 = vpop.xlane.xlu0 %1325 }
 0x48e   :  { %v1162_v32 = vadd.f32 %v1161_v6, %v1160_v1  ;;  %v1203_v35 = vadd.f32 %v1202_v40, %v1201_v26  ;;  %v1337_v11 = vadd.f32 %v1336_v19, %v1326_v4  ;;  %v1272_v49 = vadd.f32 %v1271_v34, %v1270_v23 }
 0x490   :  { %v1204_v31 = vrot.slane %v1203_v35, 2  ;;  %v1362_v21 = vsel %vm1361_vm13, %v1162_v32, 0.0  ;;  %v1273_v30 = vrot.slane %v1272_v49, 2 }
 0x491   :  { %v1329_v0 = vpop.xlane.xlu0 %1328  ;;  %v1363_v24 = vadd.f32 %v1362_v21, %v1360_v52 }
 0x492   :  { %v1205_v61 = vadd.f32 %v1204_v31, %v1203_v35  ;;  %v1338_v17 = vadd.f32 %v1337_v11, %v1329_v0  ;;  %v1274_v58 = vadd.f32 %v1273_v30, %v1272_v49 }
 0x494   :  { %v1206_v5 = vrot.slane %v1205_v61, 1  ;;  %v1339_v44 = vadd.f32 %v1338_v17, %v1332_v15  ;;  %v1275_v59 = vrot.slane %v1274_v58, 1 }
 0x496   :  { %v1340_v27 = vrot.slane %v1339_v44, 4  ;;  %v1207_v8 = vadd.f32 %v1206_v5, %v1205_v61  ;;  %v1276_v41 = vadd.f32 %v1275_v59, %v1274_v58 }
 0x498   :  { %v1341_v13 = vadd.f32 %v1340_v27, %v1339_v44  ;;  %v1365_v36 = vsel %vm1364_vm14, %v1207_v8, 0.0  ;;  %v1368_v48 = vsel %vm1367_vm15, %v1276_v41, 0.0 }
 0x499   :  { %v1366_v28 = vadd.f32 %v1365_v36, %v1363_v24 }
 0x49a   :  { %v1342_v14 = vrot.slane %v1341_v13, 2 }
 0x49b   :  { %v1369_v20 = vadd.f32 %v1368_v48, %v1366_v28 }
 0x49c   :  { %v1343_v51 = vadd.f32 %v1342_v14, %v1341_v13 }
 0x49e   :  { %v1344_v10 = vrot.slane %v1343_v51, 1 }
 0x4a0   :  { %v1345_v62 = vadd.f32 %v1344_v10, %v1343_v51 }
 0x4a2   :  { %v1371_v60 = vsel %vm1370_vm2, %v1345_v62, 0.0 }
 0x4a3   :  { %v1372_v2 = vadd.f32 %v1371_v60, %v1369_v20 }
 0x4a5   :  { %1373 = vst [vmem:[#allocation2] sm:$0xff] %v1372_v2 }
 0x4a6   :  { %2364 = shalt.err (!%p2361_p8)
}
 0x4a7   :  { %1383 = dma.vmem_to_hbm [thread:$0]  %s1381_s18, 128, %s3862_s2, [#allocation3]  }
 0x4a8   :  { %2581 = dma.done.wait [#allocation3], 128  }
 0x4a9   :  { %2582 = vsyncadd [#allocation3], 4294967168 }
 0x4aa   :  { %1387 = vsyncpa [#allocation3], 1 }

</bundles_post_ra>
